<compile_context>
chip_gen: v7x
topology: tpu7x:2x2x1
jax: 0.10.0
libtpu: 0.0.40
codegen_flags: <defaults>
</compile_context>

<pallas_src>
import functools

import jax
import jax.numpy as jnp
from jax.experimental import pallas as pl
from jax.experimental.pallas import tpu as pltpu

_EPS = 1e-5
_GROUPS = 8


def _out_hw(n):
    # 3x3 conv, stride 2, padding 1.
    return (n + 2 - 3) // 2 + 1


def _round_up(n, m):
    return ((n + m - 1) // m) * m


def _fdot(a, b):
    # f32 matmul (GroupNorm group-mix + FC); tiny M=1 tiles, cost negligible.
    return jnp.dot(a, b, precision=jax.lax.Precision.HIGHEST,
                   preferred_element_type=jnp.float32)


# ----------------------------------------------------------------------------
# Fused kernel: conv1 + 3x GroupNorm blocks + conv2/conv3 + avg-pool + Linear
# ----------------------------------------------------------------------------
def _depth_cnn_kernel(rows2, rows3,
                      patch_ref, w1_ref, aff1_ref, gg1_ref,
                      g2_ref, w2_ref, aff2_ref, gg2_ref,
                      g3_ref, w3_ref, aff3_ref, gg3_ref,
                      fcw_ref, fcb_ref, o_ref):
    def gn_relu_clamp(y, aff_ref, gg_ref):
        # GroupNorm (two-pass centered, biased variance) + affine + ReLU + clamp.
        # Stats: XLU sublane sum + one tiny (1,C)@(C,C) group-mix matmul
        # (1/N folded into gg), then VPU broadcasting -- no big MXU selectors.
        gg = gg_ref[...]
        mean_b = _fdot(jnp.sum(y, axis=0, keepdims=True), gg)       # (1, C)
        d = y - mean_b
        var_b = _fdot(jnp.sum(d * d, axis=0, keepdims=True), gg)    # (1, C)
        yn = d * jax.lax.rsqrt(var_b + _EPS)
        yn = yn * aff_ref[1:2, :] + aff_ref[2:3, :]                  # gamma, beta
        return jnp.minimum(jnp.maximum(yn, 0.0), 50.0)               # ReLU + clamp

    def conv(h, g_ref, w_ref, aff_ref, n_rows, clamp_val):
        # 3x3 / stride-2 / pad-1 conv as TWO MXU ops:
        #   1) M-stacked one-hot gather matmul (zero rows == zero padding),
        #   2) im2col weight matmul with K = 9*Cin.
        ro_pad = g_ref.shape[0] // 9
        p = jnp.dot(g_ref[...], h.astype(jnp.bfloat16),
                    preferred_element_type=jnp.float32)              # (9*ro_pad, Cin)
        im2col = jnp.concatenate(
            [p[k * ro_pad:(k + 1) * ro_pad, :] for k in range(9)],
            axis=1).astype(jnp.bfloat16)                             # (ro_pad, 9*Cin)
        y = jnp.dot(im2col, w_ref[...],
                    preferred_element_type=jnp.float32)[:n_rows, :]  # (n_rows, Cout)
        y = y + aff_ref[0:1, :]                                      # conv bias
        return jnp.clip(y, -clamp_val, clamp_val)

    # ---- layer 1: wrapper-side im2col (Cin=1) -> single bf16 MXU matmul ----
    y1 = jnp.dot(patch_ref[...].astype(jnp.bfloat16), w1_ref[...],
                 preferred_element_type=jnp.float32)                 # (rows1, 16)
    y1 = jnp.clip(y1 + aff1_ref[0:1, :], -10.0, 10.0)
    h1 = gn_relu_clamp(y1, aff1_ref, gg1_ref)                        # (rows1, 16)

    # ---- layer 2 ----
    h2 = gn_relu_clamp(conv(h1, g2_ref, w2_ref, aff2_ref, rows2, 50.0),
                       aff2_ref, gg2_ref)                            # (rows2, 32)

    # ---- layer 3 ----
    h3 = gn_relu_clamp(conv(h2, g3_ref, w3_ref, aff3_ref, rows3, 50.0),
                       aff3_ref, gg3_ref)                            # (rows3, 64)

    # ---- AdaptiveAvgPool2d((1,1)) + Linear (only HBM store) ----
    pooled = jnp.sum(h3, axis=0, keepdims=True) * (1.0 / float(rows3))
    out = _fdot(pooled, fcw_ref[...]) + fcb_ref[...]                 # (1, D)
    o_ref[...] = out.reshape(1, 1, -1).astype(o_ref.dtype)


# ----------------------------------------------------------------------------
# Wrapper-side constant builders (per-image, tiny; constant-folded under jit)
# ----------------------------------------------------------------------------
def _gather_stack(h_in, w_in):
    """One-hot gather (9*ro_pad, h_in*w_in) with taps stacked along M."""
    ho, wo = _out_hw(h_in), _out_hw(w_in)
    ro = ho * wo
    ro_pad = max(8, _round_up(ro, 8))             # sublane-aligned tap blocks
    ri = h_in * w_in
    oy, ox = jnp.arange(ho), jnp.arange(wo)
    iy, ix = jnp.arange(h_in), jnp.arange(w_in)
    mats = []
    for ky in range(3):
        for kx in range(3):
            rm = iy[None, :] == (2 * oy - 1 + ky)[:, None]          # (ho, h_in)
            cm = ix[None, :] == (2 * ox - 1 + kx)[:, None]          # (wo, w_in)
            g = (rm[:, None, :, None] & cm[None, :, None, :]).reshape(ro, ri)
            g = jnp.pad(g.astype(jnp.float32), ((0, ro_pad - ro), (0, 0)))
            mats.append(g)                        # all-zero rows == zero padding
    return jnp.concatenate(mats, axis=0).astype(jnp.bfloat16), ho, wo


def _conv_wstack(w_oihw):
    """(O,I,3,3) -> (9*I, O) tap-major (k = ky*3+kx), bf16."""
    cout, cin = w_oihw.shape[0], w_oihw.shape[1]
    return (jnp.transpose(w_oihw, (2, 3, 1, 0))
            .reshape(9 * cin, cout).astype(jnp.bfloat16))


def _group_matrix(c, rows):
    """(C,C) group-mix matrix with 1/N folded in (N = rows * channels/group)."""
    cpg = c // _GROUPS
    same = (jnp.arange(c)[:, None] // cpg) == (jnp.arange(c)[None, :] // cpg)
    return same.astype(jnp.float32) * (1.0 / float(rows * cpg))


def _affine(bias, gamma, beta):
    return jnp.stack([bias, gamma, beta]).astype(jnp.float32)        # (3, C)


# ----------------------------------------------------------------------------
# Full forward (matches DepthCNN.forward)
# ----------------------------------------------------------------------------
@jax.jit
def depth_cnn_forward(x_nchw, params):
    b, cin, h, w = x_nchw.shape
    assert cin == 1
    d = params['fc_w'].shape[1]

    h1, w1 = _out_hw(h), _out_hw(w)
    h2, w2 = _out_hw(h1), _out_hw(w1)
    h3, w3 = _out_hw(h2), _out_hw(w2)
    rows1, rows2, rows3 = h1 * w1, h2 * w2, h3 * w3
    assert rows1 % 8 == 0

    # clamp(-5, 5) once on the raw input, then layer-1 im2col on the wrapper
    # (Cin == 1): (B*rows1, 9) patches, lane-padded to 16.
    xc = jnp.clip(x_nchw[:, 0].astype(jnp.float32), -5.0, 5.0)       # (B, H, W)
    xp = jnp.pad(xc, ((0, 0), (1, 1), (1, 1)))
    cols = []
    for ky in range(3):
        for kx in range(3):
            cols.append(xp[:, ky:ky + 2 * h1:2, kx:kx + 2 * w1:2])   # (B, h1, w1)
    patches = jnp.stack(cols, axis=-1).reshape(b * rows1, 9)
    patches = jnp.pad(patches, ((0, 0), (0, 7)))                     # (B*rows1, 16)

    w1s = jnp.pad(_conv_wstack(params['w1']), ((0, 7), (0, 0)))      # (16, 16)
    g2, _, _ = _gather_stack(h1, w1)                                 # (144, rows1)
    g3, _, _ = _gather_stack(h2, w2)                                 # (72, rows2)

    inputs = [
        patches,
        w1s, _affine(params['b1'], params['g1'], params['be1']), _group_matrix(16, rows1),
        g2, _conv_wstack(params['w2']),
        _affine(params['b2'], params['g2'], params['be2']), _group_matrix(32, rows2),
        g3, _conv_wstack(params['w3']),
        _affine(params['b3'], params['g3'], params['be3']), _group_matrix(64, rows3),
        params['fc_w'].astype(jnp.float32),
        params['fc_b'].reshape(1, d).astype(jnp.float32),
    ]

    def _const_spec(arr):
        nd = arr.ndim
        return pl.BlockSpec(arr.shape, lambda i, _nd=nd: (0,) * _nd)

    in_specs = [pl.BlockSpec((rows1, 16), lambda i: (i, 0))]
    in_specs += [_const_spec(a) for a in inputs[1:]]

    kernel = functools.partial(_depth_cnn_kernel, rows2, rows3)

    out3d = pl.pallas_call(
        kernel,
        out_shape=jax.ShapeDtypeStruct((b, 1, d), jnp.float32),
        grid=(b,),                                                   # one image / step
        in_specs=in_specs,
        out_specs=pl.BlockSpec((1, 1, d), lambda i: (i, 0, 0)),
        compiler_params=pltpu.CompilerParams(
            dimension_semantics=("parallel",),
            vmem_limit_bytes=32 * 1024 * 1024),
    )(*inputs)
    return out3d.reshape(b, d)


# ----------------------------------------------------------------------------
# Parameters (mirrors the PyTorch __init__ initialization)
# ----------------------------------------------------------------------------
def init_params(key, output_dim=128):
    ks = jax.random.split(key, 4)

    def conv_w(k, cin, cout):
        # kaiming_normal_(mode='fan_out', nonlinearity='relu') then *0.1
        std = (2.0 / (cout * 9)) ** 0.5
        return jax.random.normal(k, (cout, cin, 3, 3), jnp.float32) * std * 0.1

    return dict(
        w1=conv_w(ks[0], 1, 16), b1=jnp.zeros(16), g1=jnp.ones(16), be1=jnp.zeros(16),
        w2=conv_w(ks[1], 16, 32), b2=jnp.zeros(32), g2=jnp.ones(32), be2=jnp.zeros(32),
        w3=conv_w(ks[2], 32, 64), b3=jnp.zeros(64), g3=jnp.ones(64), be3=jnp.zeros(64),
        fc_w=jax.random.normal(ks[3], (64, output_dim), jnp.float32) * 0.01,
        fc_b=jnp.zeros(output_dim),
    )


# ----------------------------------------------------------------------------
# Pure-JAX reference (PyTorch semantics); conv_dtype=bf16 mirrors kernel math.
# ----------------------------------------------------------------------------
def reference_forward(x_nchw, params, conv_dtype=jnp.float32):
    def conv(h_, w_oihw, bias):
        w_hwio = jnp.transpose(w_oihw, (2, 3, 1, 0)).astype(conv_dtype)
        y = jax.lax.conv_general_dilated(
            h_.astype(conv_dtype), w_hwio, (2, 2), ((1, 1), (1, 1)),
            dimension_numbers=('NHWC', 'HWIO', 'NHWC'),
            preferred_element_type=jnp.float32,
            precision=jax.lax.Precision.HIGHEST)
        return y + bias

    def gn(h_, gamma, beta):
        bb, hh, ww, cc = h_.shape
        hg = h_.reshape(bb, hh, ww, _GROUPS, cc // _GROUPS)
        mean = hg.mean(axis=(1, 2, 4), keepdims=True)
        var = hg.var(axis=(1, 2, 4), keepdims=True)
        hg = (hg - mean) * jax.lax.rsqrt(var + _EPS)
        return hg.reshape(bb, hh, ww, cc) * gamma + beta

    h = jnp.transpose(x_nchw, (0, 2, 3, 1)).astype(jnp.float32)
    h = jnp.clip(h, -5.0, 5.0)
    h = jnp.clip(conv(h, params['w1'], params['b1']), -10.0, 10.0)
    h = jnp.clip(jax.nn.relu(gn(h, params['g1'], params['be1'])), -50.0, 50.0)
    h = jnp.clip(conv(h, params['w2'], params['b2']), -50.0, 50.0)
    h = jnp.clip(jax.nn.relu(gn(h, params['g2'], params['be2'])), -50.0, 50.0)
    h = jnp.clip(conv(h, params['w3'], params['b3']), -50.0, 50.0)
    h = jnp.clip(jax.nn.relu(gn(h, params['g3'], params['be3'])), -50.0, 50.0)
    pooled = h.mean(axis=(1, 2))                                     # (B, 64)
    return jnp.dot(pooled, params['fc_w'],
                   precision=jax.lax.Precision.HIGHEST) + params['fc_b']


if __name__ == "__main__":
    key = jax.random.PRNGKey(0)
    k_x, k_p = jax.random.split(key)

    B, H, W = 2, 16, 16
    output_dim = 128
    x = jax.random.normal(k_x, (B, 1, H, W), jnp.float32) * 3.0      # NCHW like PyTorch
    params = init_params(k_p, output_dim=output_dim)

    out = jax.block_until_ready(depth_cnn_forward(x, params))
    assert out.shape == (B, output_dim) and out.dtype == jnp.float32

    # Tight check vs. a reference that mirrors the kernel's bf16 conv inputs.
    ref_bf16 = jax.block_until_ready(reference_forward(x, params, jnp.bfloat16))
    if not bool(jnp.allclose(out, ref_bf16, rtol=2e-2, atol=2e-3)):
        raise AssertionError(
            "mismatch vs bf16-matched reference; max abs diff = "
            f"{float(jnp.max(jnp.abs(out - ref_bf16)))}")

    # Loose sanity check vs. the full-f32 reference (bf16 conv rounding only).
    ref_f32 = jax.block_until_ready(reference_forward(x, params, jnp.float32))
    if not bool(jnp.allclose(out, ref_f32, rtol=2e-1, atol=2e-2)):
        raise AssertionError(
            "mismatch vs f32 reference; max abs diff = "
            f"{float(jnp.max(jnp.abs(out - ref_f32)))}")

    print("KERNEL_OK")
</pallas_src>

<mosaic_0001>
module attributes {stable_mosaic.version = 11 : i64} {
  func.func @_depth_cnn_kernel(%arg0: i32, %arg1: memref<64x16xf32, #tpu.memory_space<vmem>>, %arg2: memref<16x16xbf16, #tpu.memory_space<vmem>>, %arg3: memref<3x16xf32, #tpu.memory_space<vmem>>, %arg4: memref<16x16xf32, #tpu.memory_space<vmem>>, %arg5: memref<144x64xbf16, #tpu.memory_space<vmem>>, %arg6: memref<144x32xbf16, #tpu.memory_space<vmem>>, %arg7: memref<3x32xf32, #tpu.memory_space<vmem>>, %arg8: memref<32x32xf32, #tpu.memory_space<vmem>>, %arg9: memref<72x16xbf16, #tpu.memory_space<vmem>>, %arg10: memref<288x64xbf16, #tpu.memory_space<vmem>>, %arg11: memref<3x64xf32, #tpu.memory_space<vmem>>, %arg12: memref<64x64xf32, #tpu.memory_space<vmem>>, %arg13: memref<64x128xf32, #tpu.memory_space<vmem>>, %arg14: memref<1x128xf32, #tpu.memory_space<vmem>>, %arg15: memref<1x1x128xf32, #tpu.memory_space<vmem>>) attributes {dimension_semantics = [#tpu.dimension_semantics<parallel>], iteration_bounds = array<i64: 2>, scalar_prefetch = 0 : i64, scratch_operands = 0 : i64, tpu.core_type = #tpu.core_type<tc>, window_params = [{transform_indices = @transform_0, window_bounds = array<i64: 64, 16>}, {pipeline_mode = #tpu.pipeline_mode<synchronous>, transform_indices = @transform_1, window_bounds = array<i64: 16, 16>}, {pipeline_mode = #tpu.pipeline_mode<synchronous>, transform_indices = @transform_2, window_bounds = array<i64: 3, 16>}, {pipeline_mode = #tpu.pipeline_mode<synchronous>, transform_indices = @transform_3, window_bounds = array<i64: 16, 16>}, {pipeline_mode = #tpu.pipeline_mode<synchronous>, transform_indices = @transform_4, window_bounds = array<i64: 144, 64>}, {pipeline_mode = #tpu.pipeline_mode<synchronous>, transform_indices = @transform_5, window_bounds = array<i64: 144, 32>}, {pipeline_mode = #tpu.pipeline_mode<synchronous>, transform_indices = @transform_6, window_bounds = array<i64: 3, 32>}, {pipeline_mode = #tpu.pipeline_mode<synchronous>, transform_indices = @transform_7, window_bounds = array<i64: 32, 32>}, {pipeline_mode = #tpu.pipeline_mode<synchronous>, transform_indices = @transform_8, window_bounds = array<i64: 72, 16>}, {pipeline_mode = #tpu.pipeline_mode<synchronous>, transform_indices = @transform_9, window_bounds = array<i64: 288, 64>}, {pipeline_mode = #tpu.pipeline_mode<synchronous>, transform_indices = @transform_10, window_bounds = array<i64: 3, 64>}, {pipeline_mode = #tpu.pipeline_mode<synchronous>, transform_indices = @transform_11, window_bounds = array<i64: 64, 64>}, {pipeline_mode = #tpu.pipeline_mode<synchronous>, transform_indices = @transform_12, window_bounds = array<i64: 64, 128>}, {pipeline_mode = #tpu.pipeline_mode<synchronous>, transform_indices = @transform_13, window_bounds = array<i64: 1, 128>}, {transform_indices = @transform_14, window_bounds = array<i64: 1, 1, 128>}]} {
    %c0 = arith.constant 0 : index
    %c0_0 = arith.constant 0 : index
    %0 = vector.load %arg1[%c0, %c0_0] : memref<64x16xf32, #tpu.memory_space<vmem>>, vector<64x16xf32>
    %1 = arith.truncf %0 : vector<64x16xf32> to vector<64x16xbf16>
    %c0_1 = arith.constant 0 : index
    %c0_2 = arith.constant 0 : index
    %2 = vector.load %arg2[%c0_1, %c0_2] : memref<16x16xbf16, #tpu.memory_space<vmem>>, vector<16x16xbf16>
    %cst = arith.constant dense<0.000000e+00> : vector<64x16xf32>
    %3 = tpu.matmul %1, %2, %cst {dimension_numbers = #tpu.dot_dimension_numbers<[1], [0], [0], [1], [0, 0, 1, 1], [], []>} : vector<64x16xbf16>, vector<16x16xbf16>, vector<64x16xf32> -> vector<64x16xf32>
    %c0_3 = arith.constant 0 : index
    %c0_4 = arith.constant 0 : index
    %4 = vector.load %arg3[%c0_3, %c0_4] : memref<3x16xf32, #tpu.memory_space<vmem>>, vector<1x16xf32>
    %5 = vector.broadcast %4 : vector<1x16xf32> to vector<64x16xf32>
    %6 = arith.addf %3, %5 : vector<64x16xf32>
    %cst_5 = arith.constant -1.000000e+01 : f32
    %cst_6 = arith.constant 1.000000e+01 : f32
    %7 = vector.broadcast %cst_5 : f32 to vector<64x16xf32>
    %8 = arith.maximumf %7, %6 : vector<64x16xf32>
    %9 = vector.broadcast %cst_6 : f32 to vector<64x16xf32>
    %10 = arith.minimumf %9, %8 : vector<64x16xf32>
    %c0_7 = arith.constant 0 : index
    %c0_8 = arith.constant 0 : index
    %11 = vector.load %arg4[%c0_7, %c0_8] : memref<16x16xf32, #tpu.memory_space<vmem>>, vector<16x16xf32>
    %cst_9 = arith.constant dense<0.000000e+00> : vector<16xf32>
    %12 = vector.multi_reduction <add>, %10, %cst_9 [0] : vector<64x16xf32> to vector<16xf32>
    %13 = vector.shape_cast %12 : vector<16xf32> to vector<1x16xf32>
    %cst_10 = arith.constant dense<0.000000e+00> : vector<1x16xf32>
    %14 = tpu.matmul %13, %11, %cst_10 {dimension_numbers = #tpu.dot_dimension_numbers<[1], [0], [0], [1], [0, 0, 1, 1], [], []>, precision = #tpu.contract_precision<fp32>} : vector<1x16xf32>, vector<16x16xf32>, vector<1x16xf32> -> vector<1x16xf32>
    %15 = vector.broadcast %14 : vector<1x16xf32> to vector<64x16xf32>
    %16 = arith.subf %10, %15 : vector<64x16xf32>
    %17 = arith.mulf %16, %16 : vector<64x16xf32>
    %cst_11 = arith.constant dense<0.000000e+00> : vector<16xf32>
    %18 = vector.multi_reduction <add>, %17, %cst_11 [0] : vector<64x16xf32> to vector<16xf32>
    %19 = vector.shape_cast %18 : vector<16xf32> to vector<1x16xf32>
    %cst_12 = arith.constant dense<0.000000e+00> : vector<1x16xf32>
    %20 = tpu.matmul %19, %11, %cst_12 {dimension_numbers = #tpu.dot_dimension_numbers<[1], [0], [0], [1], [0, 0, 1, 1], [], []>, precision = #tpu.contract_precision<fp32>} : vector<1x16xf32>, vector<16x16xf32>, vector<1x16xf32> -> vector<1x16xf32>
    %cst_13 = arith.constant 9.99999974E-6 : f32
    %21 = vector.broadcast %cst_13 : f32 to vector<1x16xf32>
    %22 = arith.addf %20, %21 : vector<1x16xf32>
    %23 = math.rsqrt %22 : vector<1x16xf32>
    %24 = vector.broadcast %23 : vector<1x16xf32> to vector<64x16xf32>
    %25 = arith.mulf %16, %24 : vector<64x16xf32>
    %c1 = arith.constant 1 : index
    %c0_14 = arith.constant 0 : index
    %26 = vector.load %arg3[%c1, %c0_14] : memref<3x16xf32, #tpu.memory_space<vmem>>, vector<1x16xf32>
    %27 = vector.broadcast %26 : vector<1x16xf32> to vector<64x16xf32>
    %28 = arith.mulf %25, %27 : vector<64x16xf32>
    %c2 = arith.constant 2 : index
    %c0_15 = arith.constant 0 : index
    %29 = vector.load %arg3[%c2, %c0_15] : memref<3x16xf32, #tpu.memory_space<vmem>>, vector<1x16xf32>
    %30 = vector.broadcast %29 : vector<1x16xf32> to vector<64x16xf32>
    %31 = arith.addf %28, %30 : vector<64x16xf32>
    %cst_16 = arith.constant 0.000000e+00 : f32
    %32 = vector.broadcast %cst_16 : f32 to vector<64x16xf32>
    %33 = arith.maximumf %31, %32 : vector<64x16xf32>
    %cst_17 = arith.constant 5.000000e+01 : f32
    %34 = vector.broadcast %cst_17 : f32 to vector<64x16xf32>
    %35 = arith.minimumf %33, %34 : vector<64x16xf32>
    %c0_18 = arith.constant 0 : index
    %c0_19 = arith.constant 0 : index
    %36 = vector.load %arg5[%c0_18, %c0_19] : memref<144x64xbf16, #tpu.memory_space<vmem>>, vector<144x64xbf16>
    %37 = arith.truncf %35 : vector<64x16xf32> to vector<64x16xbf16>
    %cst_20 = arith.constant dense<0.000000e+00> : vector<144x16xf32>
    %38 = tpu.matmul %36, %37, %cst_20 {dimension_numbers = #tpu.dot_dimension_numbers<[1], [0], [0], [1], [0, 0, 1, 1], [], []>} : vector<144x64xbf16>, vector<64x16xbf16>, vector<144x16xf32> -> vector<144x16xf32>
    %39 = vector.extract_strided_slice %38 {offsets = [0, 0], sizes = [16, 16], strides = [1, 1]} : vector<144x16xf32> to vector<16x16xf32>
    %40 = vector.extract_strided_slice %38 {offsets = [16, 0], sizes = [16, 16], strides = [1, 1]} : vector<144x16xf32> to vector<16x16xf32>
    %41 = vector.extract_strided_slice %38 {offsets = [32, 0], sizes = [16, 16], strides = [1, 1]} : vector<144x16xf32> to vector<16x16xf32>
    %42 = vector.extract_strided_slice %38 {offsets = [48, 0], sizes = [16, 16], strides = [1, 1]} : vector<144x16xf32> to vector<16x16xf32>
    %43 = vector.extract_strided_slice %38 {offsets = [64, 0], sizes = [16, 16], strides = [1, 1]} : vector<144x16xf32> to vector<16x16xf32>
    %44 = vector.extract_strided_slice %38 {offsets = [80, 0], sizes = [16, 16], strides = [1, 1]} : vector<144x16xf32> to vector<16x16xf32>
    %45 = vector.extract_strided_slice %38 {offsets = [96, 0], sizes = [16, 16], strides = [1, 1]} : vector<144x16xf32> to vector<16x16xf32>
    %46 = vector.extract_strided_slice %38 {offsets = [112, 0], sizes = [16, 16], strides = [1, 1]} : vector<144x16xf32> to vector<16x16xf32>
    %47 = vector.extract_strided_slice %38 {offsets = [128, 0], sizes = [16, 16], strides = [1, 1]} : vector<144x16xf32> to vector<16x16xf32>
    %48 = tpu.concatenate %39, %40, %41, %42, %43, %44, %45, %46, %47 in 1 : vector<16x16xf32>, vector<16x16xf32>, vector<16x16xf32>, vector<16x16xf32>, vector<16x16xf32>, vector<16x16xf32>, vector<16x16xf32>, vector<16x16xf32>, vector<16x16xf32> -> vector<16x144xf32>
    %49 = arith.truncf %48 : vector<16x144xf32> to vector<16x144xbf16>
    %c0_21 = arith.constant 0 : index
    %c0_22 = arith.constant 0 : index
    %50 = vector.load %arg6[%c0_21, %c0_22] : memref<144x32xbf16, #tpu.memory_space<vmem>>, vector<144x32xbf16>
    %cst_23 = arith.constant dense<0.000000e+00> : vector<16x32xf32>
    %51 = tpu.matmul %49, %50, %cst_23 {dimension_numbers = #tpu.dot_dimension_numbers<[1], [0], [0], [1], [0, 0, 1, 1], [], []>} : vector<16x144xbf16>, vector<144x32xbf16>, vector<16x32xf32> -> vector<16x32xf32>
    %c0_24 = arith.constant 0 : index
    %c0_25 = arith.constant 0 : index
    %52 = vector.load %arg7[%c0_24, %c0_25] : memref<3x32xf32, #tpu.memory_space<vmem>>, vector<1x32xf32>
    %53 = vector.broadcast %52 : vector<1x32xf32> to vector<16x32xf32>
    %54 = arith.addf %51, %53 : vector<16x32xf32>
    %cst_26 = arith.constant -5.000000e+01 : f32
    %cst_27 = arith.constant 5.000000e+01 : f32
    %55 = vector.broadcast %cst_26 : f32 to vector<16x32xf32>
    %56 = arith.maximumf %55, %54 : vector<16x32xf32>
    %57 = vector.broadcast %cst_27 : f32 to vector<16x32xf32>
    %58 = arith.minimumf %57, %56 : vector<16x32xf32>
    %c0_28 = arith.constant 0 : index
    %c0_29 = arith.constant 0 : index
    %59 = vector.load %arg8[%c0_28, %c0_29] : memref<32x32xf32, #tpu.memory_space<vmem>>, vector<32x32xf32>
    %cst_30 = arith.constant dense<0.000000e+00> : vector<32xf32>
    %60 = vector.multi_reduction <add>, %58, %cst_30 [0] : vector<16x32xf32> to vector<32xf32>
    %61 = vector.shape_cast %60 : vector<32xf32> to vector<1x32xf32>
    %cst_31 = arith.constant dense<0.000000e+00> : vector<1x32xf32>
    %62 = tpu.matmul %61, %59, %cst_31 {dimension_numbers = #tpu.dot_dimension_numbers<[1], [0], [0], [1], [0, 0, 1, 1], [], []>, precision = #tpu.contract_precision<fp32>} : vector<1x32xf32>, vector<32x32xf32>, vector<1x32xf32> -> vector<1x32xf32>
    %63 = vector.broadcast %62 : vector<1x32xf32> to vector<16x32xf32>
    %64 = arith.subf %58, %63 : vector<16x32xf32>
    %65 = arith.mulf %64, %64 : vector<16x32xf32>
    %cst_32 = arith.constant dense<0.000000e+00> : vector<32xf32>
    %66 = vector.multi_reduction <add>, %65, %cst_32 [0] : vector<16x32xf32> to vector<32xf32>
    %67 = vector.shape_cast %66 : vector<32xf32> to vector<1x32xf32>
    %cst_33 = arith.constant dense<0.000000e+00> : vector<1x32xf32>
    %68 = tpu.matmul %67, %59, %cst_33 {dimension_numbers = #tpu.dot_dimension_numbers<[1], [0], [0], [1], [0, 0, 1, 1], [], []>, precision = #tpu.contract_precision<fp32>} : vector<1x32xf32>, vector<32x32xf32>, vector<1x32xf32> -> vector<1x32xf32>
    %cst_34 = arith.constant 9.99999974E-6 : f32
    %69 = vector.broadcast %cst_34 : f32 to vector<1x32xf32>
    %70 = arith.addf %68, %69 : vector<1x32xf32>
    %71 = math.rsqrt %70 : vector<1x32xf32>
    %72 = vector.broadcast %71 : vector<1x32xf32> to vector<16x32xf32>
    %73 = arith.mulf %64, %72 : vector<16x32xf32>
    %c1_35 = arith.constant 1 : index
    %c0_36 = arith.constant 0 : index
    %74 = vector.load %arg7[%c1_35, %c0_36] : memref<3x32xf32, #tpu.memory_space<vmem>>, vector<1x32xf32>
    %75 = vector.broadcast %74 : vector<1x32xf32> to vector<16x32xf32>
    %76 = arith.mulf %73, %75 : vector<16x32xf32>
    %c2_37 = arith.constant 2 : index
    %c0_38 = arith.constant 0 : index
    %77 = vector.load %arg7[%c2_37, %c0_38] : memref<3x32xf32, #tpu.memory_space<vmem>>, vector<1x32xf32>
    %78 = vector.broadcast %77 : vector<1x32xf32> to vector<16x32xf32>
    %79 = arith.addf %76, %78 : vector<16x32xf32>
    %cst_39 = arith.constant 0.000000e+00 : f32
    %80 = vector.broadcast %cst_39 : f32 to vector<16x32xf32>
    %81 = arith.maximumf %79, %80 : vector<16x32xf32>
    %cst_40 = arith.constant 5.000000e+01 : f32
    %82 = vector.broadcast %cst_40 : f32 to vector<16x32xf32>
    %83 = arith.minimumf %81, %82 : vector<16x32xf32>
    %c0_41 = arith.constant 0 : index
    %c0_42 = arith.constant 0 : index
    %84 = vector.load %arg9[%c0_41, %c0_42] : memref<72x16xbf16, #tpu.memory_space<vmem>>, vector<72x16xbf16>
    %85 = arith.truncf %83 : vector<16x32xf32> to vector<16x32xbf16>
    %cst_43 = arith.constant dense<0.000000e+00> : vector<72x32xf32>
    %86 = tpu.matmul %84, %85, %cst_43 {dimension_numbers = #tpu.dot_dimension_numbers<[1], [0], [0], [1], [0, 0, 1, 1], [], []>} : vector<72x16xbf16>, vector<16x32xbf16>, vector<72x32xf32> -> vector<72x32xf32>
    %87 = vector.extract_strided_slice %86 {offsets = [0, 0], sizes = [8, 32], strides = [1, 1]} : vector<72x32xf32> to vector<8x32xf32>
    %88 = vector.extract_strided_slice %86 {offsets = [8, 0], sizes = [8, 32], strides = [1, 1]} : vector<72x32xf32> to vector<8x32xf32>
    %89 = vector.extract_strided_slice %86 {offsets = [16, 0], sizes = [8, 32], strides = [1, 1]} : vector<72x32xf32> to vector<8x32xf32>
    %90 = vector.extract_strided_slice %86 {offsets = [24, 0], sizes = [8, 32], strides = [1, 1]} : vector<72x32xf32> to vector<8x32xf32>
    %91 = vector.extract_strided_slice %86 {offsets = [32, 0], sizes = [8, 32], strides = [1, 1]} : vector<72x32xf32> to vector<8x32xf32>
    %92 = vector.extract_strided_slice %86 {offsets = [40, 0], sizes = [8, 32], strides = [1, 1]} : vector<72x32xf32> to vector<8x32xf32>
    %93 = vector.extract_strided_slice %86 {offsets = [48, 0], sizes = [8, 32], strides = [1, 1]} : vector<72x32xf32> to vector<8x32xf32>
    %94 = vector.extract_strided_slice %86 {offsets = [56, 0], sizes = [8, 32], strides = [1, 1]} : vector<72x32xf32> to vector<8x32xf32>
    %95 = vector.extract_strided_slice %86 {offsets = [64, 0], sizes = [8, 32], strides = [1, 1]} : vector<72x32xf32> to vector<8x32xf32>
    %96 = tpu.concatenate %87, %88, %89, %90, %91, %92, %93, %94, %95 in 1 : vector<8x32xf32>, vector<8x32xf32>, vector<8x32xf32>, vector<8x32xf32>, vector<8x32xf32>, vector<8x32xf32>, vector<8x32xf32>, vector<8x32xf32>, vector<8x32xf32> -> vector<8x288xf32>
    %97 = arith.truncf %96 : vector<8x288xf32> to vector<8x288xbf16>
    %c0_44 = arith.constant 0 : index
    %c0_45 = arith.constant 0 : index
    %98 = vector.load %arg10[%c0_44, %c0_45] : memref<288x64xbf16, #tpu.memory_space<vmem>>, vector<288x64xbf16>
    %cst_46 = arith.constant dense<0.000000e+00> : vector<8x64xf32>
    %99 = tpu.matmul %97, %98, %cst_46 {dimension_numbers = #tpu.dot_dimension_numbers<[1], [0], [0], [1], [0, 0, 1, 1], [], []>} : vector<8x288xbf16>, vector<288x64xbf16>, vector<8x64xf32> -> vector<8x64xf32>
    %100 = vector.extract_strided_slice %99 {offsets = [0, 0], sizes = [4, 64], strides = [1, 1]} : vector<8x64xf32> to vector<4x64xf32>
    %c0_47 = arith.constant 0 : index
    %c0_48 = arith.constant 0 : index
    %101 = vector.load %arg11[%c0_47, %c0_48] : memref<3x64xf32, #tpu.memory_space<vmem>>, vector<1x64xf32>
    %102 = vector.broadcast %101 : vector<1x64xf32> to vector<4x64xf32>
    %103 = arith.addf %100, %102 : vector<4x64xf32>
    %cst_49 = arith.constant -5.000000e+01 : f32
    %cst_50 = arith.constant 5.000000e+01 : f32
    %104 = vector.broadcast %cst_49 : f32 to vector<4x64xf32>
    %105 = arith.maximumf %104, %103 : vector<4x64xf32>
    %106 = vector.broadcast %cst_50 : f32 to vector<4x64xf32>
    %107 = arith.minimumf %106, %105 : vector<4x64xf32>
    %c0_51 = arith.constant 0 : index
    %c0_52 = arith.constant 0 : index
    %108 = vector.load %arg12[%c0_51, %c0_52] : memref<64x64xf32, #tpu.memory_space<vmem>>, vector<64x64xf32>
    %cst_53 = arith.constant dense<0.000000e+00> : vector<64xf32>
    %109 = vector.multi_reduction <add>, %107, %cst_53 [0] : vector<4x64xf32> to vector<64xf32>
    %110 = vector.shape_cast %109 : vector<64xf32> to vector<1x64xf32>
    %cst_54 = arith.constant dense<0.000000e+00> : vector<1x64xf32>
    %111 = tpu.matmul %110, %108, %cst_54 {dimension_numbers = #tpu.dot_dimension_numbers<[1], [0], [0], [1], [0, 0, 1, 1], [], []>, precision = #tpu.contract_precision<fp32>} : vector<1x64xf32>, vector<64x64xf32>, vector<1x64xf32> -> vector<1x64xf32>
    %112 = vector.broadcast %111 : vector<1x64xf32> to vector<4x64xf32>
    %113 = arith.subf %107, %112 : vector<4x64xf32>
    %114 = arith.mulf %113, %113 : vector<4x64xf32>
    %cst_55 = arith.constant dense<0.000000e+00> : vector<64xf32>
    %115 = vector.multi_reduction <add>, %114, %cst_55 [0] : vector<4x64xf32> to vector<64xf32>
    %116 = vector.shape_cast %115 : vector<64xf32> to vector<1x64xf32>
    %cst_56 = arith.constant dense<0.000000e+00> : vector<1x64xf32>
    %117 = tpu.matmul %116, %108, %cst_56 {dimension_numbers = #tpu.dot_dimension_numbers<[1], [0], [0], [1], [0, 0, 1, 1], [], []>, precision = #tpu.contract_precision<fp32>} : vector<1x64xf32>, vector<64x64xf32>, vector<1x64xf32> -> vector<1x64xf32>
    %cst_57 = arith.constant 9.99999974E-6 : f32
    %118 = vector.broadcast %cst_57 : f32 to vector<1x64xf32>
    %119 = arith.addf %117, %118 : vector<1x64xf32>
    %120 = math.rsqrt %119 : vector<1x64xf32>
    %121 = vector.broadcast %120 : vector<1x64xf32> to vector<4x64xf32>
    %122 = arith.mulf %113, %121 : vector<4x64xf32>
    %c1_58 = arith.constant 1 : index
    %c0_59 = arith.constant 0 : index
    %123 = vector.load %arg11[%c1_58, %c0_59] : memref<3x64xf32, #tpu.memory_space<vmem>>, vector<1x64xf32>
    %124 = vector.broadcast %123 : vector<1x64xf32> to vector<4x64xf32>
    %125 = arith.mulf %122, %124 : vector<4x64xf32>
    %c2_60 = arith.constant 2 : index
    %c0_61 = arith.constant 0 : index
    %126 = vector.load %arg11[%c2_60, %c0_61] : memref<3x64xf32, #tpu.memory_space<vmem>>, vector<1x64xf32>
    %127 = vector.broadcast %126 : vector<1x64xf32> to vector<4x64xf32>
    %128 = arith.addf %125, %127 : vector<4x64xf32>
    %cst_62 = arith.constant 0.000000e+00 : f32
    %129 = vector.broadcast %cst_62 : f32 to vector<4x64xf32>
    %130 = arith.maximumf %128, %129 : vector<4x64xf32>
    %cst_63 = arith.constant 5.000000e+01 : f32
    %131 = vector.broadcast %cst_63 : f32 to vector<4x64xf32>
    %132 = arith.minimumf %130, %131 : vector<4x64xf32>
    %cst_64 = arith.constant dense<0.000000e+00> : vector<64xf32>
    %133 = vector.multi_reduction <add>, %132, %cst_64 [0] : vector<4x64xf32> to vector<64xf32>
    %134 = vector.shape_cast %133 : vector<64xf32> to vector<1x64xf32>
    %cst_65 = arith.constant 2.500000e-01 : f32
    %135 = vector.broadcast %cst_65 : f32 to vector<1x64xf32>
    %136 = arith.mulf %134, %135 : vector<1x64xf32>
    %c0_66 = arith.constant 0 : index
    %c0_67 = arith.constant 0 : index
    %137 = vector.load %arg13[%c0_66, %c0_67] : memref<64x128xf32, #tpu.memory_space<vmem>>, vector<64x128xf32>
    %cst_68 = arith.constant dense<0.000000e+00> : vector<1x128xf32>
    %138 = tpu.matmul %136, %137, %cst_68 {dimension_numbers = #tpu.dot_dimension_numbers<[1], [0], [0], [1], [0, 0, 1, 1], [], []>, precision = #tpu.contract_precision<fp32>} : vector<1x64xf32>, vector<64x128xf32>, vector<1x128xf32> -> vector<1x128xf32>
    %c0_69 = arith.constant 0 : index
    %c0_70 = arith.constant 0 : index
    %139 = vector.load %arg14[%c0_69, %c0_70] : memref<1x128xf32, #tpu.memory_space<vmem>>, vector<1x128xf32>
    %140 = arith.addf %138, %139 : vector<1x128xf32>
    %141 = vector.shape_cast %140 : vector<1x128xf32> to vector<1x1x128xf32>
    %c0_71 = arith.constant 0 : index
    %c0_72 = arith.constant 0 : index
    %c0_73 = arith.constant 0 : index
    %142 = vector.load %arg15[%c0_71, %c0_72, %c0_73] : memref<1x1x128xf32, #tpu.memory_space<vmem>>, vector<1x1x128xf32>
    tpu.vector_store %arg15[%c0_71, %c0_72, %c0_73], %141 {strides = array<i32>} : memref<1x1x128xf32, #tpu.memory_space<vmem>>, vector<1x1x128xf32>,
    return
  }
  func.func @transform_0(%arg0: i32) -> (i32, i32) {
    %c0_i32 = arith.constant 0 : i32
    %c0_i32_0 = arith.constant 0 : i32
    return %arg0, %c0_i32 : i32, i32
  }
  func.func @transform_1(%arg0: i32) -> (i32, i32) {
    %c0_i32 = arith.constant 0 : i32
    %c0_i32_0 = arith.constant 0 : i32
    %c0_i32_1 = arith.constant 0 : i32
    return %c0_i32, %c0_i32_0 : i32, i32
  }
  func.func @transform_2(%arg0: i32) -> (i32, i32) {
    %c0_i32 = arith.constant 0 : i32
    %c0_i32_0 = arith.constant 0 : i32
    %c0_i32_1 = arith.constant 0 : i32
    return %c0_i32, %c0_i32_0 : i32, i32
  }
  func.func @transform_3(%arg0: i32) -> (i32, i32) {
    %c0_i32 = arith.constant 0 : i32
    %c0_i32_0 = arith.constant 0 : i32
    %c0_i32_1 = arith.constant 0 : i32
    return %c0_i32, %c0_i32_0 : i32, i32
  }
  func.func @transform_4(%arg0: i32) -> (i32, i32) {
    %c0_i32 = arith.constant 0 : i32
    %c0_i32_0 = arith.constant 0 : i32
    %c0_i32_1 = arith.constant 0 : i32
    return %c0_i32, %c0_i32_0 : i32, i32
  }
  func.func @transform_5(%arg0: i32) -> (i32, i32) {
    %c0_i32 = arith.constant 0 : i32
    %c0_i32_0 = arith.constant 0 : i32
    %c0_i32_1 = arith.constant 0 : i32
    return %c0_i32, %c0_i32_0 : i32, i32
  }
  func.func @transform_6(%arg0: i32) -> (i32, i32) {
    %c0_i32 = arith.constant 0 : i32
    %c0_i32_0 = arith.constant 0 : i32
    %c0_i32_1 = arith.constant 0 : i32
    return %c0_i32, %c0_i32_0 : i32, i32
  }
  func.func @transform_7(%arg0: i32) -> (i32, i32) {
    %c0_i32 = arith.constant 0 : i32
    %c0_i32_0 = arith.constant 0 : i32
    %c0_i32_1 = arith.constant 0 : i32
    return %c0_i32, %c0_i32_0 : i32, i32
  }
  func.func @transform_8(%arg0: i32) -> (i32, i32) {
    %c0_i32 = arith.constant 0 : i32
    %c0_i32_0 = arith.constant 0 : i32
    %c0_i32_1 = arith.constant 0 : i32
    return %c0_i32, %c0_i32_0 : i32, i32
  }
  func.func @transform_9(%arg0: i32) -> (i32, i32) {
    %c0_i32 = arith.constant 0 : i32
    %c0_i32_0 = arith.constant 0 : i32
    %c0_i32_1 = arith.constant 0 : i32
    return %c0_i32, %c0_i32_0 : i32, i32
  }
  func.func @transform_10(%arg0: i32) -> (i32, i32) {
    %c0_i32 = arith.constant 0 : i32
    %c0_i32_0 = arith.constant 0 : i32
    %c0_i32_1 = arith.constant 0 : i32
    return %c0_i32, %c0_i32_0 : i32, i32
  }
  func.func @transform_11(%arg0: i32) -> (i32, i32) {
    %c0_i32 = arith.constant 0 : i32
    %c0_i32_0 = arith.constant 0 : i32
    %c0_i32_1 = arith.constant 0 : i32
    return %c0_i32, %c0_i32_0 : i32, i32
  }
  func.func @transform_12(%arg0: i32) -> (i32, i32) {
    %c0_i32 = arith.constant 0 : i32
    %c0_i32_0 = arith.constant 0 : i32
    %c0_i32_1 = arith.constant 0 : i32
    return %c0_i32, %c0_i32_0 : i32, i32
  }
  func.func @transform_13(%arg0: i32) -> (i32, i32) {
    %c0_i32 = arith.constant 0 : i32
    %c0_i32_0 = arith.constant 0 : i32
    %c0_i32_1 = arith.constant 0 : i32
    return %c0_i32, %c0_i32_0 : i32, i32
  }
  func.func @transform_14(%arg0: i32) -> (i32, i32, i32) {
    %c0_i32 = arith.constant 0 : i32
    %c0_i32_0 = arith.constant 0 : i32
    %c0_i32_1 = arith.constant 0 : i32
    return %arg0, %c0_i32, %c0_i32_0 : i32, i32, i32
  }
}

</mosaic_0001>

<bundles_post_ra>
// kernel: depth_cnn_forward.1
= control target key start
LH: loop header
LB: loop body
LE: loop exit
PB: predicated region body
PF: predicated region fallthrough
CT: control target
= control target key end

     0   :  { %s7921_s0 = inlined_call_operand.vmem [shape: f32[128,16], index: 0, kind: input, shape index: {}]   ;;  %s7922_s1 = inlined_call_operand.vmem [shape: bf16[16,16], index: 1, kind: input, shape index: {}]   ;;  %s7923_s2 = inlined_call_operand.vmem [shape: f32[3,16], index: 2, kind: input, shape index: {}]   ;;  %s7924_s3 = inlined_call_operand.vmem [shape: f32[16,16], index: 3, kind: input, shape index: {}]   ;;  %s7925_s4 = inlined_call_operand.vmem [shape: bf16[144,64], index: 4, kind: input, shape index: {}]   ;;  %s7926_s5 = inlined_call_operand.vmem [shape: bf16[144,32], index: 5, kind: input, shape index: {}]   ;;  %s7927_s6 = inlined_call_operand.vmem [shape: f32[3,32], index: 6, kind: input, shape index: {}]   ;;  %s7928_s7 = inlined_call_operand.vmem [shape: f32[32,32], index: 7, kind: input, shape index: {}]   ;;  %s7929_s8 = inlined_call_operand.vmem [shape: bf16[72,16], index: 8, kind: input, shape index: {}]   ;;  %s7930_s9 = inlined_call_operand.vmem [shape: bf16[288,64], index: 9, kind: input, shape index: {}]   ;;  %s7931_s10 = inlined_call_operand.vmem [shape: f32[3,64], index: 10, kind: input, shape index: {}]   ;;  %s7932_s11 = inlined_call_operand.vmem [shape: f32[64,64], index: 11, kind: input, shape index: {}]   ;;  %s7933_s12 = inlined_call_operand.vmem [shape: f32[64,128], index: 12, kind: input, shape index: {}]   ;;  %s7934_s13 = inlined_call_operand.vmem [shape: f32[1,128], index: 13, kind: input, shape index: {}]   ;;  %s7935_s14 = inlined_call_operand.hbm [shape: f32[2,1,128], index: 14, kind: output, shape index: {}]  }
   0x1   :  { %7939 = sst [smem:[#allocation5_spill]] %s7921_s0 }
   0x2   :  { %7940 = sst [smem:[#allocation6_spill]] %s7922_s1 }
   0x3   :  { %7941 = sst [smem:[#allocation7_spill]] %s7923_s2 }
   0x4   :  { %7942 = sst [smem:[#allocation8_spill]] %s7924_s3 }
   0x5   :  { %19 = vsyncpa [#allocation3], 0 }
   0x6   :  { %21 = vsyncpa [#allocation3 + $0x1], 0  ;;  %s6950_s29 = smov 0   ;;  %s6952_s30 = smov 0  }
   0x7   :  { %s6954_s15 = smov 0   ;;  %s6956_s16 = smov 0  }
   0x8 LB: > { %s6971_s17 = sadd.s32 4294967295, %s6861_s16   ;;  %s5206_s18 = sadd.s32 4294967294, %s6861_s16   ;;  %s6861_s16 = sphi %s6956_s16, %s7955_s16   ;;  %s6857_s15 = sphi %s6954_s15, %s7954_s15   ;;  %s6853_s30 = sphi %s6952_s30, %s7953_s30   ;;  %s6849_s29 = sphi %s6950_s29, %s7952_s29  }
   0x9   : > { %s6975_s19 = sadd.s32 1, %s6861_s16   ;;  %s333_s20 = sadd.s32 1, %s6857_s15 }
   0xa   : > { %s330_s21 = ssub.s32 %s6861_s16, %s6975_s19  ;;  %p343_p0 = scmp.ne.s32.totalorder %s6857_s15, %s6853_s30 }
   0xb   : > { %p331_p1 = scmp.eq.s32.totalorder %s330_s21, 0  ;;  %p344_p2 = scmp.eq.s32.totalorder %s6971_s17, 1 }
   0xc   : > { %p349_p3 = scmp.ne.s32.totalorder %s6853_s30, %s6849_s29  ;;  %p350_p4 = scmp.eq.s32.totalorder %s5206_s18, 1 }
   0xd   : > { %s6986_s22 = scalar_select %p331_p1, %s6857_s15, %s333_s20  }
   0xe   : > { %p6988_p5 = por %p344_p2, %p343_p0  ;;  %p6992_p6 = por %p350_p4, %p349_p3 }
   0xf   : > { %p5209_p7 = scmp.ge.s32.totalorder %s6861_s16, 1  ;;  %p416_p8 = scmp.lt.s32.totalorder %s6861_s16, 3 }
  0x11   : > { %p417_p9 = pnand %p5209_p7, %p416_p8 }
  0x12   : > { %s7945_s1 = sld [smem:[#allocation6_spill]] (!%p417_p9)  ;;  %s5210_s27 = sshll.u32 (!%p417_p9), %s6971_s17, 3  ;;  %vm493_vm0 = vcmask (!%p417_p9), 130048   ;;  %v6863_v24 = vmov (!%p417_p9), 0.0|0.0   ;;  %vm6864_vm1 = vmmov (!%p417_p9), 0   ;;  %v6865_v27 = vmov (!%p417_p9), 0.0  }
  0x13   : > { %420 = sbr.rel (%p417_p9) target bundleno = 3635 (0xe33), region = 76  ;;  %p462_p10 = scmp.lt.s32.totalorder (!%p417_p9), %s5210_s27, 15  ;;  %6249 = vmatprep.subr.bf16.mxu1 (!%p417_p9), %v6863_v24  ;;  %5625 = vmatprep.mubr.msk.f32.mxu1 (!%p417_p9), %vm6864_vm1, %v6865_v27  ;;  %vm1697_vm2 = vcmask (!%p417_p9), 523264   ;;  %vm1888_vm3 = vcmask (!%p417_p9), 261120   ;;  %vm1891_vm4 = vcmask (!%p417_p9), 392192   ;;  %vm1896_vm5 = vcmask (!%p417_p9), 654336  }
  0x14   : > { %s7946_s0 = sld [smem:[#allocation5_spill]] (!%p417_p9)  ;;  %s7947_s3 = sld [smem:[#allocation8_spill]] (!%p417_p9)  ;;  %vm1899_vm6 = vcmask (!%p417_p9), 785408   ;;  %vm1902_vm7 = vcmask (!%p417_p9), 916480   ;;  %vm3459_vm8 = vcmask (!%p417_p9), 519168  }
  0x15   : > { %s7948_s2 = sld [smem:[#allocation7_spill]] (!%p417_p9)  ;;  %s6867_s26 = smov (!%p417_p9), 16  }
  0x16   : > { %s7937_s20 = smov (!%p417_p9), 64   ;;  %s6873_s18 = smov (!%p417_p9), 112  }
  0x18   : > { %v6751_v0 = vld [vmem:[%s7945_s1] sm:$0xff] (!%p417_p9)   ;;  %s7949_s1 = smov (!%p417_p9), 32  }
  0x19   : > { %5604 = vmatprep.subr.bf16.mxu0 (!%p417_p9), %v6751_v0 }
  0x1a   : > { %5605 = vmatpush3.bf16.msra.mxu0 %v6751_v0  ;;  %s7957_s27 = smov (!%p462_p10, %s5210_s27), 15  ;;  %v587_v13 = vld [vmem:[%s7947_s3] sm:$0xff]  ;;  %v588_v14 = vld [vmem:[%s7947_s3 + $0x8] sm:$0xff] }
  0x1b   : > { %s5211_s28 = sshll.u32 %s7957_s27, 3  ;;  %v614_v15 = vand.u32 4294901760, %v587_v13  ;;  %v617_v16 = vand.u32 4294901760, %v588_v14  ;;  %6246 = vmatprep.subr.bf16.mxu0 %v6863_v24  ;;  %v5212_v31 = vld [vmem:[%s7948_s2] ss:$0 sm:$0xff]  ;;  %s6869_s27 = smov 48  }
  0x1c   : > { %s465_s21 = scalar_lea.vmem %s7946_s0, %s5211_s28  ;;  %s6872_s28 = smov 80  }
  0x1d   : > { %v468_v1 = vld [vmem:[%s465_s21] sm:$0xff]  ;;  %v469_v2 = vld [vmem:[%s465_s21 + $0x8] sm:$0xff]  ;;  %v470_v3 = vld [vmem:[%s465_s21 + $0x10] sm:$0xff]  ;;  %v692_v17 = vsub.f32 %v587_v13, %v614_v15  ;;  %v699_v18 = vsub.f32 %v588_v14, %v617_v16  ;;  %v7015_v21 = vpack.c.bf16 %v617_v16, %v614_v15  ;;  %s5294_s0 = sshll.u32 %s6971_s17, 4  ;;  %s6874_s17 = smov [#allocation2]  }
  0x1e   : > { %v476_v4 = vpack.c.bf16 %v469_v2, %v468_v1  ;;  %v471_v5 = vld [vmem:[%s465_s21 + $0x18] sm:$0xff]  ;;  %v472_v6 = vld [vmem:[%s465_s21 + $0x20] sm:$0xff]  ;;  %v473_v7 = vld [vmem:[%s465_s21 + $0x28] sm:$0xff] }
  0x1f   : > { %v477_v8 = vpack.c.bf16 %v471_v5, %v470_v3  ;;  %v478_v9 = vpack.c.bf16 %v473_v7, %v472_v6  ;;  %v474_v10 = vld [vmem:[%s465_s21 + $0x30] sm:$0xff]  ;;  %v475_v11 = vld [vmem:[%s465_s21 + $0x38] sm:$0xff]  ;;  %v693_v19 = vand.u32 4294901760, %v692_v17  ;;  %v700_v20 = vand.u32 4294901760, %v699_v18  ;;  %s7938_s21 = smov 32  }
  0x20   : > { %5606 = vmatprep.mubr.msk.bf16.mxu0 %vm493_vm0, %v476_v4  ;;  %v479_v12 = vpack.c.bf16 %v475_v11, %v474_v10  ;;  %v7029_v29 = vpack.c.bf16 %v699_v18, %v692_v17 }
  0x21   : > { %5607 = vmatmul.mubr.msk.bf16.vlgmr.msra.gmra.mrb[0].mxu0 %vm493_vm0, %v477_v8  ;;  %v694_v22 = vsub.f32 %v692_v17, %v693_v19  ;;  %v701_v23 = vsub.f32 %v699_v18, %v700_v20  ;;  %v7031_v30 = vpack.c.bf16 %v700_v20, %v693_v19 }
  0x22   : > { %5610 = vmatprep.mubr.msk.bf16.mxu0 %vm493_vm0, %v478_v9  ;;  %6248 = vmatpush3.bf16.msra.mxu0 %v7015_v21 }
  0x23   : > { %v695_v25 = vand.u32 4294901760, %v694_v22  ;;  %v702_v26 = vand.u32 4294901760, %v701_v23  ;;  %6264 = vmatprep.subr.bf16.mxu0 %v6863_v24  ;;  %v1072_v22 = vlaneseq }
  0x25   : > { %v7025_v28 = vpack.c.bf16 %v702_v26, %v695_v25  ;;  %v1073_v23 = vshrl.u32 %v1072_v22, 7 }
  0x27   : > { %6251 = vmatpush3.bf16.msra.mxu1 %v7025_v28  ;;  %v7103_v25 = vsub.s32 0, %v1073_v23 }
  0x28   : > { %6252 = vmatprep.subr.bf16.mxu1 %v6863_v24 }
  0x29   : > { %5611 = vmatmul.mubr.msk.bf16.gmra.mrb[4].mxu0 %vm493_vm0, %v479_v12 }
  0x2a   : > { %5618 = vmatprep.mubr.msk.f32.mxu0 %vm6864_vm1, %v6865_v27 }
  0xf4   : > { %v5608_v32 = vpop.f32.mrb[0].mxu0 }
  0xf5   : > { %v540_v33 = vpop.f32.mrb[1].mxu0  ;;  %v7036_v34 = vadd.f32 %v5608_v32, %v5212_v31 }
  0xf6   : > { %v7038_v35 = vadd.f32 %v5212_v31, %v540_v33  ;;  %v5609_v36 = vpop.f32.mrb[2].mxu0 }
  0xf7   : > { %v543_v37 = vpop.f32.mrb[3].mxu0  ;;  %v7041_v39 = vadd.f32 %v5609_v36, %v5212_v31  ;;  %v5220_v41 = vclamps-f32 %v7036_v34, 10.0 }
  0xf8   : > { %v5218_v38 = vclamps-f32 %v7038_v35, 10.0  ;;  %v7043_v40 = vadd.f32 %v5212_v31, %v543_v37 }
  0xf9   : > { %v5221_v44 = vclamps-f32 %v7041_v39, 10.0  ;;  %v592_v49 = vsel %vm493_vm0, %v5220_v41, 0.0 }
  0xfa   : > { %v5219_v42 = vclamps-f32 %v7043_v40, 10.0  ;;  %v589_v43 = vsel %vm493_vm0, %v5218_v38, 0.0 }
  0xfb   : > { %v594_v55 = vsel %vm493_vm0, %v5221_v44, 0.0 }
  0xfc   : > { %v590_v45 = vsel %vm493_vm0, %v5219_v42, 0.0  ;;  %v5612_v46 = vpop.f32.mrb[4].mxu0 }
  0xfd   : > { %v591_v47 = vadd.f32 %v590_v45, %v589_v43  ;;  %v556_v48 = vpop.f32.mrb[5].mxu0  ;;  %v7057_v50 = vadd.f32 %v5612_v46, %v5212_v31 }
  0xfe   : > { %v7059_v51 = vadd.f32 %v5212_v31, %v556_v48  ;;  %v5613_v52 = vpop.f32.mrb[6].mxu0 }
  0xff   : > { %v593_v53 = vadd.f32 %v592_v49, %v591_v47  ;;  %v559_v54 = vpop.f32.mrb[7].mxu0  ;;  %v7065_v57 = vadd.f32 %v5613_v52, %v5212_v31  ;;  %v5224_v60 = vclamps-f32 %v7057_v50, 10.0 }
 0x100   : > { %v5222_v56 = vclamps-f32 %v7059_v51, 10.0  ;;  %v7067_v58 = vadd.f32 %v5212_v31, %v559_v54 }
 0x101   : > { %v595_v59 = vadd.f32 %v594_v55, %v593_v53  ;;  %v5225_v0 = vclamps-f32 %v7065_v57, 10.0  ;;  %v600_v3 = vsel %vm493_vm0, %v5224_v60, 0.0 }
 0x102   : > { %v596_v61 = vsel %vm493_vm0, %v5222_v56, 0.0  ;;  %v5223_v62 = vclamps-f32 %v7067_v58, 10.0 }
 0x103   : > { %v597_v63 = vadd.f32 %v596_v61, %v595_v59  ;;  %v602_v5 = vsel %vm493_vm0, %v5225_v0, 0.0 }
 0x104   : > { %v598_v1 = vsel %vm493_vm0, %v5223_v62, 0.0 }
 0x105   : > { %v599_v2 = vadd.f32 %v598_v1, %v597_v63 }
 0x107   : > { %v601_v4 = vadd.f32 %v600_v3, %v599_v2 }
 0x109   : > { %v603_v6 = vadd.f32 %v602_v5, %v601_v4 }
 0x10b   : > { %v604_v7 = vrot.slane %v603_v6, 4 }
 0x10d   : > { %v605_v8 = vadd.f32 %v604_v7, %v603_v6 }
 0x10f   : > { %v606_v9 = vrot.slane %v605_v8, 2 }
 0x111   : > { %v607_v10 = vadd.f32 %v606_v9, %v605_v8 }
 0x113   : > { %v608_v11 = vrot.slane %v607_v10, 1 }
 0x115   : > { %v609_v12 = vadd.f32 %v608_v11, %v607_v10 }
 0x117   : > { %v611_v13 = vsel %vm493_vm0, %v609_v12, 0 }
 0x118   : > { %v680_v14 = vand.u32 4294901760, %v611_v13 }
 0x11a   : > { %v681_v15 = vsub.f32 %v611_v13, %v680_v14  ;;  %5626 = vmatmul.mubr.f32.vlgmr.msra.gmra.mrb[0].mxu1 %v680_v14 }
 0x11b   : > { %6254 = vmatpush3.bf16.msra.mxu1 %v7029_v29  ;;  %5632 = vmatprep.mubr.msk.f32.mxu1 %vm6864_vm1, %v6865_v27 }
 0x11c   : > { %v682_v16 = vand.u32 4294901760, %v681_v15  ;;  %6255 = vmatprep.subr.bf16.mxu1 %v6863_v24 }
 0x11e   : > { %v683_v17 = vsub.f32 %v681_v15, %v682_v16 }
 0x120   : > { %v684_v18 = vand.u32 4294901760, %v683_v17 }
 0x122   : > { %5619 = vmatmul.mubr.f32.vlgmr.msra.gmra.mrb[8].mxu0 %v684_v18  ;;  %5633 = vmatmul.mubr.f32.vlgmr.msra.gmra.mrb[0].mxu1 %v681_v15 }
 0x123   : > { %6257 = vmatpush3.bf16.msra.mxu1 %v7015_v21  ;;  %5639 = vmatprep.mubr.msk.f32.mxu1 %vm6864_vm1, %v6865_v27 }
 0x124   : > { %6258 = vmatprep.subr.bf16.mxu1 %v6863_v24  ;;  %6266 = vmatpush3.bf16.msra.mxu0 %v7015_v21 }
 0x125   : > { %5660 = vmatprep.mubr.msk.f32.mxu0 %vm6864_vm1, %v6865_v27  ;;  %6267 = vmatprep.subr.bf16.mxu0 %v6863_v24 }
 0x12a   : > { %5640 = vmatmul.mubr.f32.vlgmr.msra.gmra.mrb[0].mxu1 %v682_v16 }
 0x12b   : > { %6260 = vmatpush3.bf16.msra.mxu1 %v7031_v30  ;;  %5646 = vmatprep.mubr.msk.f32.mxu1 %vm6864_vm1, %v6865_v27 }
 0x12c   : > { %6261 = vmatprep.subr.bf16.mxu1 %v6863_v24 }
 0x132   : > { %5647 = vmatmul.mubr.f32.vlgmr.msra.gmra.mrb[0].mxu1 %v680_v14 }
 0x133   : > { %6263 = vmatpush3.bf16.msra.mxu1 %v7015_v21  ;;  %5653 = vmatprep.mubr.msk.f32.mxu1 %vm6864_vm1, %v6865_v27 }
 0x134   : > { %6570 = vmatprep.subr.bf16.mxu1 %v6865_v27 }
 0x13a   : > { %5654 = vmatmul.mubr.f32.vlgmr.msra.gmra.mrb[0].mxu1 %v680_v14 }
 0x13b   : > { %5730 = vmatprep.mubr.msk.bf16.mxu1 %vm6864_vm1, %v6865_v27 }
 0x1f5   : > { %v686_v19 = vpop.f32.mrb[8].mxu0 }
 0x1f6   : > { %v5620_v20 = vpop.f32.mrb[9].mxu0 }
 0x20d   : > { %v1068_v26 = vpop.f32.mrb[0].mxu1 }
 0x20e   : > { %v6578_v31 = vadd.f32 %v1068_v26, %v686_v19  ;;  %v5655_v32 = vpop.f32.mrb[1].mxu1  ;;  %v5227_v19 = vld [vmem:[%s7948_s2 + $0x2] ss:$0 sm:$0xff] }
 0x210   : > { %v1075_v33 = vrot.slane %v6578_v31, %v7103_v25 }
 0x212   : > { %v7108_v36 = vsub.f32 %v5218_v38, %v1075_v33  ;;  %v7112_v37 = vsub.f32 %v5219_v42, %v1075_v33  ;;  %v7116_v43 = vsub.f32 %v5220_v41, %v1075_v33  ;;  %v7120_v45 = vsub.f32 %v5221_v44, %v1075_v33 }
 0x213   : > { %v7122_v46 = vsub.f32 %v5222_v56, %v1075_v33  ;;  %v7130_v40 = vsub.f32 %v5223_v62, %v1075_v33  ;;  %v7138_v44 = vsub.f32 %v5224_v60, %v1075_v33  ;;  %v7145_v52 = vsub.f32 %v5225_v0, %v1075_v33 }
 0x214   : > { %v1084_v47 = vmul.f32 %v7108_v36, %v7108_v36  ;;  %v1085_v35 = vmul.f32 %v7112_v37, %v7112_v37  ;;  %v1086_v38 = vmul.f32 %v7116_v43, %v7116_v43  ;;  %v1087_v34 = vmul.f32 %v7120_v45, %v7120_v45 }
 0x215   : > { %v1088_v48 = vmul.f32 %v7122_v46, %v7122_v46  ;;  %v1089_v53 = vmul.f32 %v7130_v40, %v7130_v40  ;;  %v1090_v50 = vmul.f32 %v7138_v44, %v7138_v44  ;;  %v1091_v59 = vmul.f32 %v7145_v52, %v7145_v52 }
 0x216   : > { %v1092_v39 = vsel %vm493_vm0, %v1084_v47, 0.0  ;;  %v1093_v41 = vsel %vm493_vm0, %v1085_v35, 0.0  ;;  %v1095_v49 = vsel %vm493_vm0, %v1086_v38, 0.0  ;;  %v1097_v54 = vsel %vm493_vm0, %v1087_v34, 0.0 }
 0x217   : > { %v1094_v42 = vadd.f32 %v1093_v41, %v1092_v39  ;;  %v1099_v56 = vsel %vm493_vm0, %v1088_v48, 0.0  ;;  %v1101_v60 = vsel %vm493_vm0, %v1089_v53, 0.0  ;;  %v1103_v61 = vsel %vm493_vm0, %v1090_v50, 0.0 }
 0x218   : > { %v1105_v63 = vsel %vm493_vm0, %v1091_v59, 0.0 }
 0x219   : > { %v1096_v51 = vadd.f32 %v1095_v49, %v1094_v42 }
 0x21b   : > { %v1098_v55 = vadd.f32 %v1097_v54, %v1096_v51 }
 0x21d   : > { %v1100_v58 = vadd.f32 %v1099_v56, %v1098_v55 }
 0x21f   : > { %v1102_v57 = vadd.f32 %v1101_v60, %v1100_v58 }
 0x221   : > { %v1104_v62 = vadd.f32 %v1103_v61, %v1102_v57 }
 0x223   : > { %v1106_v0 = vadd.f32 %v1105_v63, %v1104_v62 }
 0x225   : > { %v1107_v1 = vrot.slane %v1106_v0, 4 }
 0x227   : > { %v1108_v2 = vadd.f32 %v1107_v1, %v1106_v0 }
 0x229   : > { %v1109_v3 = vrot.slane %v1108_v2, 2 }
 0x22b   : > { %v1110_v4 = vadd.f32 %v1109_v3, %v1108_v2  ;;  %v6752_v3 = vld [vmem:[%s7925_s4] sm:$0xff]  }
 0x22d   : > { %v1111_v5 = vrot.slane %v1110_v4, 1 }
 0x22f   : > { %v1112_v6 = vadd.f32 %v1111_v5, %v1110_v4  ;;  %v6757_v4 = vld [vmem:[%s7925_s4 + $0x30] sm:$0xff]   ;;  %v6753_v5 = vld [vmem:[%s7925_s4 + $0x8] sm:$0xff]  }
 0x231   : > { %v1114_v7 = vsel %vm493_vm0, %v1112_v6, 0  ;;  %v6759_v6 = vld [vmem:[%s7925_s4 + $0x38] sm:$0xff]  }
 0x232   : > { %v1183_v8 = vand.u32 4294901760, %v1114_v7 }
 0x234   : > { %v1184_v9 = vsub.f32 %v1114_v7, %v1183_v8  ;;  %v6754_v7 = vld [vmem:[%s7925_s4 + $0x10] sm:$0xff]  }
 0x236   : > { %v1185_v10 = vand.u32 4294901760, %v1184_v9 }
 0x238   : > { %v1186_v11 = vsub.f32 %v1184_v9, %v1185_v10 }
 0x23a   : > { %v1187_v12 = vand.u32 4294901760, %v1186_v11  ;;  %v6758_v11 = vld [vmem:[%s7925_s4 + $0x28] sm:$0xff]  }
 0x23c   : > { %5661 = vmatmul.mubr.f32.vlgmr.msra.gmra.mrb[10].mxu0 %v1187_v12  ;;  %v6761_v12 = vld [vmem:[%s7926_s5] sm:$0xff]  }
 0x23d   : > { %6269 = vmatpush3.bf16.msra.mxu0 %v7025_v28  ;;  %5667 = vmatprep.mubr.msk.f32.mxu0 %vm6864_vm1, %v6865_v27 }
 0x23e   : > { %6270 = vmatprep.subr.bf16.mxu0 %v6863_v24 }
 0x244   : > { %5668 = vmatmul.mubr.f32.vlgmr.msra.gmra.mrb[10].mxu0 %v1183_v8 }
 0x245   : > { %6272 = vmatpush3.bf16.msra.mxu0 %v7029_v29  ;;  %5674 = vmatprep.mubr.msk.f32.mxu0 %vm6864_vm1, %v6865_v27 }
 0x246   : > { %6273 = vmatprep.subr.bf16.mxu0 %v6863_v24 }
 0x24c   : > { %5675 = vmatmul.mubr.f32.vlgmr.msra.gmra.mrb[10].mxu0 %v1184_v9  ;;  %v6755_v9 = vld [vmem:[%s7925_s4 + $0x18] sm:$0xff]  }
 0x24d   : > { %6275 = vmatpush3.bf16.msra.mxu0 %v7015_v21  ;;  %5681 = vmatprep.mubr.msk.f32.mxu0 %vm6864_vm1, %v6865_v27 }
 0x24e   : > { %6276 = vmatprep.subr.bf16.mxu0 %v6863_v24 }
 0x254   : > { %5682 = vmatmul.mubr.f32.vlgmr.msra.gmra.mrb[10].mxu0 %v1185_v10  ;;  %v6756_v10 = vld [vmem:[%s7925_s4 + $0x20] sm:$0xff]  }
 0x255   : > { %6278 = vmatpush3.bf16.msra.mxu0 %v7031_v30  ;;  %5688 = vmatprep.mubr.msk.f32.mxu0 %vm6864_vm1, %v6865_v27 }
 0x256   : > { %6279 = vmatprep.subr.bf16.mxu0 %v6863_v24 }
 0x25c   : > { %5689 = vmatmul.mubr.f32.vlgmr.msra.gmra.mrb[10].mxu0 %v1183_v8 }
 0x25d   : > { %6281 = vmatpush3.bf16.msra.mxu0 %v7015_v21  ;;  %5695 = vmatprep.mubr.msk.f32.mxu0 %vm6864_vm1, %v6865_v27  ;;  %v5226_v21 = vld [vmem:[%s7948_s2 + $0x1] ss:$0 sm:$0xff]  ;;  %s7950_s2 = smov 64  }
 0x25e   : > { %5698 = vmatprep.subr.bf16.mxu0 %v6865_v27 }
 0x264   : > { %5696 = vmatmul.mubr.f32.vlgmr.msra.gmra.mrb[10].mxu0 %v1183_v8  ;;  %v6760_v8 = vld [vmem:[%s7925_s4 + $0x40] sm:$0xff]  }
 0x265   : > { %5706 = vmatprep.mubr.msk.bf16.mxu0 %vm6864_vm1, %v6865_v27 }
 0x337   : > { %v1571_v28 = vpop.f32.mrb[10].mxu0 }
 0x338   : > { %v6579_v29 = vadd.f32 1e-05, %v1571_v28  ;;  %v5697_v30 = vpop.f32.mrb[11].mxu0  ;;  %v6866_v28 = vmov 0  }
 0x33a   : > { %6793 = vrsqrt.f32 %v6579_v29 }
 0x344   : > { %v6794_v13 = vpop.eup %6793 }
 0x345   : > { %v1579_v14 = vrot.slane %v6794_v13, %v7103_v25 }
 0x347   : > { %v1580_v15 = vmul.f32 %v1579_v14, %v7108_v36  ;;  %v1581_v16 = vmul.f32 %v1579_v14, %v7112_v37  ;;  %v1582_v17 = vmul.f32 %v1579_v14, %v7116_v43  ;;  %v1583_v18 = vmul.f32 %v1579_v14, %v7120_v45 }
 0x348   : > { %v1584_v20 = vmul.f32 %v1579_v14, %v7122_v46  ;;  %v1585_v22 = vmul.f32 %v1579_v14, %v7130_v40  ;;  %v1586_v23 = vmul.f32 %v1579_v14, %v7138_v44  ;;  %v1587_v26 = vmul.f32 %v1579_v14, %v7145_v52 }
 0x349   : > { %v1593_v31 = vmul.f32 %v5226_v21, %v1580_v15  ;;  %v1594_v32 = vmul.f32 %v5226_v21, %v1581_v16  ;;  %v1595_v33 = vmul.f32 %v5226_v21, %v1582_v17  ;;  %v1596_v36 = vmul.f32 %v5226_v21, %v1583_v18  ;;  %v6762_v16 = vld [vmem:[%s7926_s5 + $0x8] sm:$0xff]  }
 0x34a   : > { %v1597_v37 = vmul.f32 %v5226_v21, %v1584_v20  ;;  %v1598_v43 = vmul.f32 %v5226_v21, %v1585_v22  ;;  %v1599_v41 = vmul.f32 %v5226_v21, %v1586_v23  ;;  %v1600_v46 = vmul.f32 %v5226_v21, %v1587_v26  ;;  %v6763_v20 = vld [vmem:[%s7926_s5 + $0x10] sm:$0xff]  }
 0x34b   : > { %v1606_v47 = vadd.f32 %v5227_v19, %v1593_v31  ;;  %v1607_v45 = vadd.f32 %v5227_v19, %v1594_v32  ;;  %v1608_v35 = vadd.f32 %v5227_v19, %v1595_v33  ;;  %v1609_v38 = vadd.f32 %v5227_v19, %v1596_v36  ;;  %v6764_v36 = vld [vmem:[%s7926_s5 + $0x18] sm:$0xff]  }
 0x34c   : > { %v1610_v34 = vadd.f32 %v5227_v19, %v1597_v37  ;;  %v1611_v39 = vadd.f32 %v5227_v19, %v1598_v43  ;;  %v1612_v53 = vadd.f32 %v5227_v19, %v1599_v41  ;;  %v1613_v54 = vadd.f32 %v5227_v19, %v1600_v46 }
 0x34d   : > { %v1614_v42 = vmax.f32 %v1606_v47, 0.0  ;;  %v1615_v40 = vmax.f32 %v1607_v45, 0.0  ;;  %v1616_v48 = vmax.f32 %v1608_v35, 0.0  ;;  %v1617_v44 = vmax.f32 %v1609_v38, 0.0 }
 0x34e   : > { %v1618_v52 = vmax.f32 %v1610_v34, 0.0  ;;  %v1619_v58 = vmax.f32 %v1611_v39, 0.0  ;;  %v1620_v59 = vmax.f32 %v1612_v53, 0.0  ;;  %v1621_v62 = vmax.f32 %v1613_v54, 0.0  ;;  %v6765_v39 = vld [vmem:[%s7926_s5 + $0x20] sm:$0xff]  }
 0x34f   : > { %v1622_v49 = vmin.f32 %v1614_v42, 50.0  ;;  %v1623_v51 = vmin.f32 %v1615_v40, 50.0  ;;  %v1624_v50 = vmin.f32 %v1616_v48, 50.0  ;;  %v1625_v56 = vmin.f32 %v1617_v44, 50.0  ;;  %v6766_v42 = vld [vmem:[%s7926_s5 + $0x28] sm:$0xff]  }
 0x350   : > { %v1626_v57 = vmin.f32 %v1618_v52, 50.0  ;;  %v1627_v61 = vmin.f32 %v1619_v58, 50.0  ;;  %v1628_v0 = vmin.f32 %v1620_v59, 50.0  ;;  %v1629_v1 = vmin.f32 %v1621_v62, 50.0 }
 0x351   : > { %v1648_v55 = vpack.c.bf16 %v1623_v51, %v1622_v49  ;;  %v1649_v60 = vpack.c.bf16 %v1625_v56, %v1624_v50  ;;  %v6767_v49 = vld [vmem:[%s7926_s5 + $0x30] sm:$0xff]   ;;  %v6768_v56 = vld [vmem:[%s7926_s5 + $0x38] sm:$0xff]  }
 0x352   : > { %v1650_v63 = vpack.c.bf16 %v1627_v61, %v1626_v57  ;;  %v1651_v2 = vpack.c.bf16 %v1629_v1, %v1628_v0 }
 0x353   : > { %5699 = vmatpush3.bf16.msra.mxu0 %v1648_v55  ;;  %6574 = vmatpush3.bf16.msra.mxu1 %v1648_v55 }
 0x354   : > { %5700 = vmatprep.subr.bf16.mxu0 %v6865_v27  ;;  %6571 = vmatprep.subr.bf16.mxu1 %v6865_v27 }
 0x357   : > { %5701 = vmatpush3.bf16.msra.mxu0 %v1649_v60  ;;  %6575 = vmatpush3.bf16.msra.mxu1 %v1649_v60 }
 0x358   : > { %5702 = vmatprep.subr.bf16.mxu0 %v6865_v27  ;;  %6572 = vmatprep.subr.bf16.mxu1 %v6865_v27 }
 0x35b   : > { %5703 = vmatpush3.bf16.msra.mxu0 %v1650_v63  ;;  %6576 = vmatpush3.bf16.msra.mxu1 %v1650_v63  ;;  %v6769_v63 = vld [vmem:[%s7926_s5 + $0x40] sm:$0xff]  }
 0x35c   : > { %5704 = vmatprep.subr.bf16.mxu0 %v6865_v27  ;;  %6573 = vmatprep.subr.bf16.mxu1 %v6865_v27 }
 0x35f   : > { %5705 = vmatpush3.bf16.msra.mxu0 %v1651_v2  ;;  %6577 = vmatpush3.bf16.msra.mxu1 %v1651_v2 }
 0x360   : > { %6318 = vmatprep.subr.bf16.mxu1 %v6863_v24  ;;  %1987 = vmatprep.subr.bf16.mxu0 %v6866_v28 }
 0x362   : > { %5707 = vmatmul.mubr.msk.bf16.vlgmr.msra.gmra.mrb[12].mxu0 %vm1697_vm2, %v6752_v3  ;;  %5731 = vmatmul.mubr.msk.bf16.vlgmr.msra.gmra.mrb[4].mxu1 %vm1697_vm2, %v6757_v4 }
 0x363   : > { %5710 = vmatprep.mubr.msk.bf16.mxu0 %vm6864_vm1, %v6865_v27  ;;  %5734 = vmatprep.mubr.msk.bf16.mxu1 %vm6864_vm1, %v6865_v27 }
 0x364   : > { %1988 = vmatpush1.bf16.msra.mxu0 %v6761_v12 }
 0x365   : > { %1989 = vmatprep.subr.bf16.mxu0 %v6866_v28 }
 0x368   : > { %1990 = vmatpush1.bf16.msra.mxu0 %v6762_v16 }
 0x369   : > { %1991 = vmatprep.subr.bf16.mxu0 %v6866_v28 }
 0x36a   : > { %5711 = vmatmul.mubr.msk.bf16.gmra.mrb[16].mxu0 %vm1697_vm2, %v6753_v5  ;;  %5735 = vmatmul.mubr.msk.bf16.gmra.mrb[8].mxu1 %vm1697_vm2, %v6759_v6 }
 0x36b   : > { %5714 = vmatprep.mubr.msk.bf16.mxu0 %vm6864_vm1, %v6865_v27  ;;  %5738 = vmatprep.mubr.msk.bf16.mxu1 %vm6864_vm1, %v6865_v27 }
 0x36c   : > { %1992 = vmatpush1.bf16.msra.mxu0 %v6763_v20 }
 0x36d   : > { %1993 = vmatprep.subr.bf16.mxu0 %v6866_v28 }
 0x370   : > { %1994 = vmatpush1.bf16.msra.mxu0 %v6764_v36 }
 0x371   : > { %1995 = vmatprep.subr.bf16.mxu0 %v6866_v28 }
 0x372   : > { %5715 = vmatmul.mubr.msk.bf16.gmra.mrb[20].mxu0 %vm1697_vm2, %v6754_v7  ;;  %5739 = vmatmul.mubr.msk.bf16.gmra.mrb[12].mxu1 %vm1697_vm2, %v6760_v8 }
 0x373   : > { %5718 = vmatprep.mubr.msk.bf16.mxu0 %vm6864_vm1, %v6865_v27  ;;  %5816 = vmatprep.mubr.msk.f32.mxu1 %vm6864_vm1, %v6865_v27 }
 0x374   : > { %1996 = vmatpush1.bf16.msra.mxu0 %v6765_v39 }
 0x375   : > { %1997 = vmatprep.subr.bf16.mxu0 %v6866_v28 }
 0x378   : > { %1998 = vmatpush1.bf16.msra.mxu0 %v6766_v42  ;;  %v2033_v42 = vld [vmem:[%s7928_s7 + $0x8] sm:$0xff] }
 0x379   : > { %1999 = vmatprep.subr.bf16.mxu0 %v6866_v28 }
 0x37a   : > { %5719 = vmatmul.mubr.msk.bf16.gmra.mrb[24].mxu0 %vm1697_vm2, %v6755_v9 }
 0x37b   : > { %5722 = vmatprep.mubr.msk.bf16.mxu0 %vm6864_vm1, %v6865_v27 }
 0x37c   : > { %2000 = vmatpush1.bf16.msra.mxu0 %v6767_v49  ;;  %v2035_v49 = vld [vmem:[%s7928_s7 + $0x18] sm:$0xff] }
 0x37d   : > { %2001 = vmatprep.subr.bf16.mxu0 %v6866_v28 }
 0x380   : > { %2002 = vmatpush1.bf16.msra.mxu0 %v6768_v56 }
 0x381   : > { %2003 = vmatprep.subr.bf16.mxu0 %v6866_v28 }
 0x382   : > { %5723 = vmatmul.mubr.msk.bf16.gmra.mrb[28].mxu0 %vm1697_vm2, %v6756_v10 }
 0x383   : > { %5726 = vmatprep.mubr.msk.bf16.mxu0 %vm6864_vm1, %v6865_v27 }
 0x384   : > { %2004 = vmatpush1.bf16.msra.mxu0 %v6769_v63 }
 0x385   : > { %6282 = vmatprep.subr.bf16.mxu0 %v6863_v24 }
 0x38a   : > { %5727 = vmatmul.mubr.msk.bf16.gmra.mrb[32].mxu0 %vm1697_vm2, %v6758_v11 }
 0x435   : > { %v7260_v29 = vpop.f32.mrb[12].mxu0  ;;  %v7262_v30 = vpop.f32.mrb[4].mxu1 }
 0x436   : > { %v5708_v13 = vpop.f32.mrb[13].mxu0  ;;  %v5732_v14 = vpop.f32.mrb[5].mxu1 }
 0x437   : > { %v7264_v21 = vpop.f32.mrb[14].mxu0  ;;  %v7266_v15 = vpop.f32.mrb[6].mxu1 }
 0x438   : > { %v5709_v17 = vpop.f32.mrb[15].mxu0  ;;  %v6721_v18 = vpack.i.bf16 %v7266_v15, %v7262_v30  ;;  %v5733_v19 = vpop.f32.mrb[7].mxu1 }
 0x43d   : > { %v1767_v22 = vpop.f32.mrb[16].mxu0  ;;  %v7277_v23 = vpop.f32.mrb[8].mxu1 }
 0x43e   : > { %v5712_v26 = vpop.f32.mrb[17].mxu0  ;;  %v5736_v31 = vpop.f32.mrb[9].mxu1 }
 0x43f   : > { %v1770_v32 = vpop.f32.mrb[18].mxu0  ;;  %v1818_v33 = vpop.f32.mrb[10].mxu1 }
 0x440   : > { %v6701_v37 = vpack.i.bf16 %v1770_v32, %v1767_v22  ;;  %v5713_v43 = vpop.f32.mrb[19].mxu0  ;;  %v6731_v47 = vpack.i.bf16 %v1818_v33, %v7277_v23  ;;  %v5737_v45 = vpop.f32.mrb[11].mxu1 }
 0x442   : > { %6702 = vrot.lane.b32.xlu0 %v6701_v37, %s6867_s26  ;;  %s7879_s26 = scalar_lea.hbm %s7935_s14, %s5294_s0 }
 0x445   : > { %v1775_v35 = vpop.f32.mrb[20].mxu0  ;;  %v1823_v50 = vpop.f32.mrb[12].mxu1 }
 0x446   : > { %v5716_v38 = vpop.f32.mrb[21].mxu0  ;;  %v5740_v60 = vpop.f32.mrb[13].mxu1 }
 0x447   : > { %v1778_v34 = vpop.f32.mrb[22].mxu0  ;;  %v1826_v57 = vpop.f32.mrb[14].mxu1 }
 0x448   : > { %v6706_v41 = vpack.i.bf16 %v1778_v34, %v1775_v35  ;;  %v5717_v46 = vpop.f32.mrb[23].mxu0  ;;  %v1906_v61 = vpack.c.bf16 %v1826_v57, %v1823_v50  ;;  %v5741_v62 = vpop.f32.mrb[15].mxu1 }
 0x449   : > { %v2032_v46 = vld [vmem:[%s7928_s7] sm:$0xff] }
 0x44a   : > { %6707 = vrot.lane.b32.xlu0 %v6706_v41, %s7938_s21  ;;  %5256 = vmatprep.mubr.msk.bf16.mxu0 %vm493_vm0, %v1906_v61 }
 0x44d   : > { %v1783_v40 = vpop.f32.mrb[24].mxu0 }
 0x44e   : > { %v5720_v48 = vpop.f32.mrb[25].mxu0 }
 0x44f   : > { %v1786_v44 = vpop.f32.mrb[26].mxu0  ;;  %v2049_v48 = vand.u32 4294901760, %v2032_v46 }
 0x450   : > { %v6711_v51 = vpack.i.bf16 %v1786_v44, %v1783_v40  ;;  %v5721_v52 = vpop.f32.mrb[27].mxu0  ;;  %v2034_v40 = vld [vmem:[%s7928_s7 + $0x10] sm:$0xff]  ;;  %v2052_v44 = vand.u32 4294901760, %v2033_v42 }
 0x451   : > { %v2058_v52 = vand.u32 4294901760, %v2035_v49 }
 0x452   : > { %6712 = vrot.lane.b32.xlu1 %v6711_v51, %s6869_s27  ;;  %s7936_s27 = smov 96   ;;  %v2055_v51 = vand.u32 4294901760, %v2034_v40 }
 0x453   : > { %v2150_v61 = vsub.f32 %v2035_v49, %v2058_v52 }
 0x454   : > { %v7339_v50 = vpack.c.bf16 %v2058_v52, %v2055_v51  ;;  %v2143_v57 = vsub.f32 %v2034_v40, %v2055_v51 }
 0x455   : > { %v1791_v53 = vpop.f32.mrb[28].mxu0 }
 0x456   : > { %v5724_v54 = vpop.f32.mrb[29].mxu0 }
 0x457   : > { %v1794_v55 = vpop.f32.mrb[30].mxu0  ;;  %v2129_v54 = vsub.f32 %v2032_v46, %v2049_v48 }
 0x458   : > { %v6716_v58 = vpack.i.bf16 %v1794_v55, %v1791_v53  ;;  %v5725_v59 = vpop.f32.mrb[31].mxu0  ;;  %v7336_v53 = vpack.c.bf16 %v2052_v44, %v2049_v48  ;;  %v2136_v55 = vsub.f32 %v2033_v42, %v2052_v44 }
 0x459   : > { %v2130_v56 = vand.u32 4294901760, %v2129_v54 }
 0x45a   : > { %6717 = vrot.lane.b32.xlu1 %v6716_v58, %s7937_s20  ;;  %v2137_v58 = vand.u32 4294901760, %v2136_v55  ;;  %6320 = vmatpush3.bf16.msra.mxu1 %v7336_v53 }
 0x45b   : > { %6321 = vmatprep.subr.bf16.mxu1 %v6863_v24  ;;  %v2131_v59 = vsub.f32 %v2129_v54, %v2130_v56 }
 0x45c   : > { %v2138_v60 = vsub.f32 %v2136_v55, %v2137_v58 }
 0x45d   : > { %v1799_v0 = vpop.f32.mrb[32].mxu0  ;;  %v2132_v62 = vand.u32 4294901760, %v2131_v59 }
 0x45e   : > { %6722 = vrot.lane.b32.xlu1 %v6721_v18, %s7936_s27  ;;  %v5728_v1 = vpop.f32.mrb[33].mxu0  ;;  %v2139_v63 = vand.u32 4294901760, %v2138_v60  ;;  %6323 = vmatpush3.bf16.msra.mxu1 %v7339_v50 }
 0x45f   : > { %v1802_v2 = vpop.f32.mrb[34].mxu0  ;;  %v2151_v1 = vand.u32 4294901760, %v2150_v61  ;;  %6324 = vmatprep.subr.bf16.mxu1 %v6863_v24 }
 0x460   : > { %v6726_v3 = vpack.i.bf16 %v1802_v2, %v1799_v0  ;;  %v5729_v4 = vpop.f32.mrb[35].mxu0  ;;  %v2144_v0 = vand.u32 4294901760, %v2143_v57  ;;  %v7348_v2 = vpack.c.bf16 %v2139_v63, %v2132_v62 }
 0x461   : > { %v2152_v4 = vsub.f32 %v2150_v61, %v2151_v1 }
 0x462   : > { %6727 = vrot.lane.b32.xlu0 %v6726_v3, %s6872_s28  ;;  %v2145_v3 = vsub.f32 %v2143_v57, %v2144_v0  ;;  %s7951_s28 = smov 96  }
 0x466   : > { %6732 = vrot.lane.b32.xlu0 %v6731_v47, %s6873_s18  ;;  %s6803_s18 = sshll.u32 %s6874_s17, 4  ;;  %s6804_s18 = int_to_ptr.vmem [resolvable:$false] %s6803_s18 }
 0x467   : > { %s6805_s3 = scalar_lea.vmem %s6804_s18, 32 }
 0x4b4   : > { %v6703_v5 = vpop.permute.xlu0 %6702 }
 0x4b5   : > { %v6705_v8 = vunpack.i.h.bf16 %v6703_v5  ;;  %v6704_v9 = vunpack.i.l.bf16 %v6703_v5  ;;  %v2146_v5 = vand.u32 4294901760, %v2145_v3  ;;  %v5259_v3 = vld [vmem:[%s7927_s6 + $0x1] ss:$0 sm:$0xff] }
 0x4b7   : > { %v1887_v15 = vsel %vm493_vm0, %v7264_v21, %v6705_v8  ;;  %v1886_v16 = vsel %vm493_vm0, %v7260_v29, %v6704_v9  ;;  %v7352_v8 = vpack.c.bf16 %v2136_v55, %v2129_v54  ;;  %v7354_v9 = vpack.c.bf16 %v2150_v61, %v2143_v57 }
 0x4bc   : > { %v6708_v7 = vpop.permute.xlu0 %6707 }
 0x4bd   : > { %v6710_v11 = vunpack.i.h.bf16 %v6708_v7  ;;  %v6709_v12 = vunpack.i.l.bf16 %v6708_v7 }
 0x4bf   : > { %v1890_v17 = vsel %vm1888_vm3, %v1887_v15, %v6710_v11  ;;  %v1889_v18 = vsel %vm1888_vm3, %v1886_v16, %v6709_v12  ;;  %v7358_v11 = vpack.c.bf16 %v2151_v1, %v2144_v0  ;;  %v5246_v12 = vld [vmem:[%s7927_s6] ss:$0 sm:$0xff] }
 0x4c4   : > { %v6713_v6 = vpop.permute.xlu1 %6712 }
 0x4c5   : > { %v6715_v28 = vunpack.i.h.bf16 %v6713_v6  ;;  %v6714_v30 = vunpack.i.l.bf16 %v6713_v6  ;;  %v2153_v6 = vand.u32 4294901760, %v2152_v4 }
 0x4c7   : > { %v1893_v20 = vsel %vm1891_vm4, %v1890_v17, %v6715_v28  ;;  %v1892_v22 = vsel %vm1891_vm4, %v1889_v18, %v6714_v30  ;;  %v7350_v7 = vpack.c.bf16 %v2153_v6, %v2146_v5 }
 0x4cc   : > { %v6718_v10 = vpop.permute.xlu1 %6717 }
 0x4cd   : > { %v6720_v13 = vunpack.i.h.bf16 %v6718_v10  ;;  %v6719_v14 = vunpack.i.l.bf16 %v6718_v10  ;;  %v7356_v10 = vpack.c.bf16 %v2137_v58, %v2130_v56 }
 0x4cf   : > { %v1895_v32 = vsel %vm1697_vm2, %v1893_v20, %v6720_v13  ;;  %v1894_v33 = vsel %vm1697_vm2, %v1892_v22, %v6719_v14 }
 0x4d0   : > { %v6723_v23 = vpop.permute.xlu1 %6722 }
 0x4d1   : > { %v6725_v37 = vunpack.i.h.bf16 %v6723_v23  ;;  %v6724_v29 = vunpack.i.l.bf16 %v6723_v23 }
 0x4d4   : > { %v6728_v19 = vpop.permute.xlu0 %6727 }
 0x4d5   : > { %v6730_v26 = vunpack.i.h.bf16 %v6728_v19  ;;  %v6729_v31 = vunpack.i.l.bf16 %v6728_v19 }
 0x4d7   : > { %v1898_v36 = vsel %vm1896_vm5, %v1895_v32, %v6730_v26  ;;  %v1897_v21 = vsel %vm1896_vm5, %v1894_v33, %v6729_v31 }
 0x4d8   : > { %v6733_v43 = vpop.permute.xlu0 %6732  ;;  %v1900_v35 = vsel %vm1899_vm6, %v1897_v21, %v6724_v29  ;;  %v1901_v38 = vsel %vm1899_vm6, %v1898_v36, %v6725_v37 }
 0x4d9   : > { %v6735_v47 = vunpack.i.h.bf16 %v6733_v43  ;;  %v6734_v45 = vunpack.i.l.bf16 %v6733_v43 }
 0x4db   : > { %v1903_v34 = vsel %vm1902_vm7, %v1900_v35, %v6734_v45  ;;  %v1904_v39 = vsel %vm1902_vm7, %v1901_v38, %v6735_v47 }
 0x4dc   : > { %v1905_v41 = vpack.c.bf16 %v1904_v39, %v1903_v34 }
 0x4de   : > { %2020 = vmatmul.mubr.bf16.vlgmr.msra.gmra.mrb[36].mxu0 %v1905_v41 }
 0x4df   : > { %5750 = vmatprep.mubr.msk.f32.mxu0 %vm6864_vm1, %v6865_v27  ;;  %6284 = vmatpush3.bf16.msra.mxu0 %v7336_v53 }
 0x4e0   : > { %6285 = vmatprep.subr.bf16.mxu0 %v6863_v24 }
 0x4e3   : > { %6287 = vmatpush3.bf16.msra.mxu0 %v7339_v50 }
 0x4e4   : > { %6288 = vmatprep.subr.bf16.mxu0 %v6863_v24 }
 0x5b1   : > { %v2021_v28 = vpop.f32.mrb[36].mxu0 }
 0x5b2   : > { %v2022_v30 = vadd.f32 %v5246_v12, %v2021_v28  ;;  %v2023_v13 = vpop.f32.mrb[37].mxu0 }
 0x5b3   : > { %v2024_v14 = vpop.f32.mrb[38].mxu0  ;;  %v6770_v13 = vld [vmem:[%s7929_s8] sm:$0xff]  }
 0x5b4   : > { %v5257_v15 = vclamps-f32 %v2022_v30, 50.0  ;;  %v2025_v16 = vadd.f32 %v5246_v12, %v2024_v14  ;;  %v2026_v17 = vpop.f32.mrb[39].mxu0  ;;  %v6771_v14 = vld [vmem:[%s7929_s8 + $0x8] sm:$0xff]  }
 0x5b5   : > { %v6774_v17 = vld [vmem:[%s7929_s8 + $0x20] ss:$0 sps:$4 sm:$0xff]  }
 0x5b6   : > { %v5258_v18 = vclamps-f32 %v2025_v16, 50.0  ;;  %v2036_v19 = vsel %vm1888_vm3, %v5257_v15, 0.0  ;;  %v6773_v16 = vld [vmem:[%s7929_s8 + $0x18] sm:$0xff]  }
 0x5b8   : > { %v2037_v20 = vsel %vm1888_vm3, %v5258_v18, 0.0 }
 0x5b9   : > { %v2038_v22 = vadd.f32 %v2037_v20, %v2036_v19  ;;  %v6776_v19 = vld [vmem:[%s7930_s9] sm:$0xff]   ;;  %v6777_v20 = vld [vmem:[%s7930_s9 + $0x48] sm:$0xff]  }
 0x5bb   : > { %v2039_v23 = vrot.slane %v2038_v22, 4 }
 0x5bd   : > { %v2040_v26 = vadd.f32 %v2039_v23, %v2038_v22  ;;  %v6778_v22 = vld [vmem:[%s7930_s9 + $0x8] sm:$0xff]   ;;  %v6779_v23 = vld [vmem:[%s7930_s9 + $0x50] sm:$0xff]  }
 0x5bf   : > { %v2041_v31 = vrot.slane %v2040_v26, 2 }
 0x5c1   : > { %v2042_v32 = vadd.f32 %v2041_v31, %v2040_v26  ;;  %v6780_v26 = vld [vmem:[%s7930_s9 + $0x10] sm:$0xff]   ;;  %v6781_v31 = vld [vmem:[%s7930_s9 + $0x58] sm:$0xff]  }
 0x5c3   : > { %v2043_v33 = vrot.slane %v2042_v32, 1 }
 0x5c5   : > { %v2044_v36 = vadd.f32 %v2043_v33, %v2042_v32  ;;  %v6782_v32 = vld [vmem:[%s7930_s9 + $0x18] sm:$0xff]   ;;  %v6783_v33 = vld [vmem:[%s7930_s9 + $0x60] sm:$0xff]  }
 0x5c7   : > { %v2046_v21 = vsel %vm1888_vm3, %v2044_v36, 0  ;;  %v6784_v36 = vld [vmem:[%s7930_s9 + $0x20] sm:$0xff]  }
 0x5c8   : > { %v2117_v37 = vand.u32 4294901760, %v2046_v21 }
 0x5ca   : > { %v2118_v29 = vsub.f32 %v2046_v21, %v2117_v37  ;;  %v6785_v21 = vld [vmem:[%s7930_s9 + $0x68] sm:$0xff]  }
 0x5cc   : > { %v2119_v43 = vand.u32 4294901760, %v2118_v29 }
 0x5ce   : > { %v2120_v47 = vsub.f32 %v2118_v29, %v2119_v43 }
 0x5d0   : > { %v2121_v45 = vand.u32 4294901760, %v2120_v47 }
 0x5d2   : > { %5751 = vmatmul.mubr.f32.vlgmr.msra.gmra.mrb[40].mxu0 %v2121_v45 }
 0x5d3   : > { %6290 = vmatpush3.bf16.msra.mxu0 %v7348_v2  ;;  %5761 = vmatprep.mubr.msk.f32.mxu0 %vm6864_vm1, %v6865_v27 }
 0x5d4   : > { %6291 = vmatprep.subr.bf16.mxu0 %v6863_v24 }
 0x5d7   : > { %6293 = vmatpush3.bf16.msra.mxu0 %v7350_v7 }
 0x5d8   : > { %6294 = vmatprep.subr.bf16.mxu0 %v6863_v24 }
 0x5da   : > { %5762 = vmatmul.mubr.f32.vlgmr.msra.gmra.mrb[40].mxu0 %v2117_v37 }
 0x5db   : > { %6296 = vmatpush3.bf16.msra.mxu0 %v7352_v8  ;;  %5772 = vmatprep.mubr.msk.f32.mxu0 %vm6864_vm1, %v6865_v27 }
 0x5dc   : > { %6297 = vmatprep.subr.bf16.mxu0 %v6863_v24 }
 0x5df   : > { %6299 = vmatpush3.bf16.msra.mxu0 %v7354_v9 }
 0x5e0   : > { %6300 = vmatprep.subr.bf16.mxu0 %v6863_v24 }
 0x5e2   : > { %5773 = vmatmul.mubr.f32.vlgmr.msra.gmra.mrb[40].mxu0 %v2118_v29 }
 0x5e3   : > { %6302 = vmatpush3.bf16.msra.mxu0 %v7336_v53  ;;  %5783 = vmatprep.mubr.msk.f32.mxu0 %vm6864_vm1, %v6865_v27 }
 0x5e4   : > { %6303 = vmatprep.subr.bf16.mxu0 %v6863_v24 }
 0x5e7   : > { %6305 = vmatpush3.bf16.msra.mxu0 %v7339_v50 }
 0x5e8   : > { %6306 = vmatprep.subr.bf16.mxu0 %v6863_v24 }
 0x5ea   : > { %5784 = vmatmul.mubr.f32.vlgmr.msra.gmra.mrb[40].mxu0 %v2119_v43 }
 0x5eb   : > { %6308 = vmatpush3.bf16.msra.mxu0 %v7356_v10  ;;  %5794 = vmatprep.mubr.msk.f32.mxu0 %vm6864_vm1, %v6865_v27 }
 0x5ec   : > { %6309 = vmatprep.subr.bf16.mxu0 %v6863_v24 }
 0x5ef   : > { %6311 = vmatpush3.bf16.msra.mxu0 %v7358_v11 }
 0x5f0   : > { %6312 = vmatprep.subr.bf16.mxu0 %v6863_v24 }
 0x5f2   : > { %5795 = vmatmul.mubr.f32.vlgmr.msra.gmra.mrb[40].mxu0 %v2117_v37 }
 0x5f3   : > { %6314 = vmatpush3.bf16.msra.mxu0 %v7336_v53  ;;  %5805 = vmatprep.mubr.msk.f32.mxu0 %vm6864_vm1, %v6865_v27 }
 0x5f4   : > { %6315 = vmatprep.subr.bf16.mxu0 %v6863_v24 }
 0x5f7   : > { %6317 = vmatpush3.bf16.msra.mxu0 %v7339_v50 }
 0x5f8   : > { %5874 = vmatprep.subr.bf16.mxu0 %v6865_v27 }
 0x5fa   : > { %5806 = vmatmul.mubr.f32.vlgmr.msra.gmra.mrb[40].mxu0 %v2117_v37 }
 0x5fb   : > { %5876 = vmatprep.mubr.msk.bf16.mxu0 %vm6864_vm1, %v6865_v27 }
 0x6cd   : > { %v2529_v35 = vpop.f32.mrb[40].mxu0 }
 0x6ce   : > { %v2536_v38 = vrot.slane %v2529_v35, %v7103_v25  ;;  %v5807_v34 = vpop.f32.mrb[41].mxu0 }
 0x6cf   : > { %v6786_v34 = vld [vmem:[%s7930_s9 + $0x28] sm:$0xff]  }
 0x6d0   : > { %v2537_v39 = vsub.f32 %v5257_v15, %v2536_v38  ;;  %v2538_v41 = vsub.f32 %v5258_v18, %v2536_v38  ;;  %v6772_v15 = vld [vmem:[%s7929_s8 + $0x10] sm:$0xff]   ;;  %v6775_v18 = vld [vmem:[%s7930_s9 + $0x40] sm:$0xff]  }
 0x6d2   : > { %v2539_v46 = vmul.f32 %v2537_v39, %v2537_v39  ;;  %v2540_v42 = vmul.f32 %v2538_v41, %v2538_v41 }
 0x6d4   : > { %v2541_v40 = vsel %vm1888_vm3, %v2539_v46, 0.0  ;;  %v2542_v48 = vsel %vm1888_vm3, %v2540_v42, 0.0  ;;  %v6788_v46 = vld [vmem:[%s7930_s9 + $0x30] sm:$0xff]   ;;  %v6789_v42 = vld [vmem:[%s7930_s9 + $0x80] sm:$0xff]  }
 0x6d5   : > { %v2543_v44 = vadd.f32 %v2542_v48, %v2541_v40 }
 0x6d7   : > { %v2544_v49 = vrot.slane %v2543_v44, 4 }
 0x6d9   : > { %v2545_v51 = vadd.f32 %v2544_v49, %v2543_v44  ;;  %v6790_v49 = vld [vmem:[%s7930_s9 + $0x78] sm:$0xff]  }
 0x6db   : > { %v2546_v52 = vrot.slane %v2545_v51, 2 }
 0x6dd   : > { %v2547_v54 = vadd.f32 %v2546_v52, %v2545_v51 }
 0x6df   : > { %v2548_v55 = vrot.slane %v2547_v54, 1 }
 0x6e1   : > { %v2549_v56 = vadd.f32 %v2548_v55, %v2547_v54  ;;  %v6791_v54 = vld [vmem:[%s7930_s9 + $0x38] sm:$0xff]   ;;  %v6792_v55 = vld [vmem:[%s7930_s9 + $0x88] sm:$0xff]  }
 0x6e3   : > { %v2551_v58 = vsel %vm1888_vm3, %v2549_v56, 0 }
 0x6e4   : > { %v2622_v59 = vand.u32 4294901760, %v2551_v58 }
 0x6e6   : > { %v2623_v60 = vsub.f32 %v2551_v58, %v2622_v59 }
 0x6e8   : > { %v2624_v57 = vand.u32 4294901760, %v2623_v60 }
 0x6ea   : > { %v2625_v61 = vsub.f32 %v2623_v60, %v2624_v57 }
 0x6ec   : > { %v2626_v62 = vand.u32 4294901760, %v2625_v61 }
 0x6ee   : > { %5817 = vmatmul.mubr.f32.vlgmr.msra.gmra.mrb[2].mxu1 %v2626_v62 }
 0x6ef   : > { %6326 = vmatpush3.bf16.msra.mxu1 %v7348_v2  ;;  %5827 = vmatprep.mubr.msk.f32.mxu1 %vm6864_vm1, %v6865_v27 }
 0x6f0   : > { %6327 = vmatprep.subr.bf16.mxu1 %v6863_v24 }
 0x6f3   : > { %6329 = vmatpush3.bf16.msra.mxu1 %v7350_v7 }
 0x6f4   : > { %6330 = vmatprep.subr.bf16.mxu1 %v6863_v24 }
 0x6f6   : > { %5828 = vmatmul.mubr.f32.vlgmr.msra.gmra.mrb[2].mxu1 %v2622_v59 }
 0x6f7   : > { %6332 = vmatpush3.bf16.msra.mxu1 %v7352_v8  ;;  %5838 = vmatprep.mubr.msk.f32.mxu1 %vm6864_vm1, %v6865_v27 }
 0x6f8   : > { %6333 = vmatprep.subr.bf16.mxu1 %v6863_v24 }
 0x6fb   : > { %6335 = vmatpush3.bf16.msra.mxu1 %v7354_v9 }
 0x6fc   : > { %6336 = vmatprep.subr.bf16.mxu1 %v6863_v24 }
 0x6fe   : > { %5839 = vmatmul.mubr.f32.vlgmr.msra.gmra.mrb[2].mxu1 %v2623_v60 }
 0x6ff   : > { %6338 = vmatpush3.bf16.msra.mxu1 %v7336_v53  ;;  %5849 = vmatprep.mubr.msk.f32.mxu1 %vm6864_vm1, %v6865_v27 }
 0x700   : > { %6339 = vmatprep.subr.bf16.mxu1 %v6863_v24 }
 0x703   : > { %6341 = vmatpush3.bf16.msra.mxu1 %v7339_v50 }
 0x704   : > { %6342 = vmatprep.subr.bf16.mxu1 %v6863_v24 }
 0x706   : > { %5850 = vmatmul.mubr.f32.vlgmr.msra.gmra.mrb[2].mxu1 %v2624_v57 }
 0x707   : > { %6344 = vmatpush3.bf16.msra.mxu1 %v7356_v10  ;;  %5860 = vmatprep.mubr.msk.f32.mxu1 %vm6864_vm1, %v6865_v27 }
 0x708   : > { %6345 = vmatprep.subr.bf16.mxu1 %v6863_v24 }
 0x70b   : > { %6347 = vmatpush3.bf16.msra.mxu1 %v7358_v11 }
 0x70c   : > { %6348 = vmatprep.subr.bf16.mxu1 %v6863_v24 }
 0x70e   : > { %5861 = vmatmul.mubr.f32.vlgmr.msra.gmra.mrb[2].mxu1 %v2622_v59 }
 0x70f   : > { %6350 = vmatpush3.bf16.msra.mxu1 %v7336_v53  ;;  %5871 = vmatprep.mubr.msk.f32.mxu1 %vm6864_vm1, %v6865_v27 }
 0x710   : > { %6351 = vmatprep.subr.bf16.mxu1 %v6863_v24 }
 0x713   : > { %6353 = vmatpush3.bf16.msra.mxu1 %v7339_v50  ;;  %v5260_v50 = vld [vmem:[%s7927_s6 + $0x2] ss:$0 sm:$0xff] }
 0x714   : > { %5896 = vmatprep.subr.bf16.mxu1 %v6865_v27 }
 0x716   : > { %5872 = vmatmul.mubr.f32.vlgmr.msra.gmra.mrb[2].mxu1 %v2622_v59 }
 0x717   : > { %5900 = vmatprep.mubr.msk.bf16.mxu1 %vm6864_vm1, %v6865_v27  ;;  %5897 = vmatpush3.bf16.msra.mxu1 %v6789_v42 }
 0x718   : > { %5898 = vmatprep.subr.bf16.mxu1 %v6865_v27 }
 0x71b   : > { %5899 = vmatpush3.bf16.msra.mxu1 %v6792_v55 }
 0x71c   : > { %6354 = vmatprep.subr.bf16.mxu1 %v6863_v24 }
 0x7e9   : > { %v3034_v63 = vpop.f32.mrb[2].mxu1 }
 0x7ea   : > { %v6580_v0 = vadd.f32 1e-05, %v3034_v63  ;;  %v5873_v1 = vpop.f32.mrb[3].mxu1 }
 0x7ec   : > { %6795 = vrsqrt.f32 %v6580_v0 }
 0x7f6   : > { %v6796_v2 = vpop.eup %6795 }
 0x7f7   : > { %v3042_v53 = vrot.slane %v6796_v2, %v7103_v25 }
 0x7f9   : > { %v3043_v4 = vmul.f32 %v3042_v53, %v2537_v39  ;;  %v3044_v5 = vmul.f32 %v3042_v53, %v2538_v41  ;;  %v6787_v39 = vld [vmem:[%s7930_s9 + $0x70] sm:$0xff]  }
 0x7fb   : > { %v3050_v6 = vmul.f32 %v5259_v3, %v3043_v4  ;;  %v3051_v7 = vmul.f32 %v5259_v3, %v3044_v5 }
 0x7fd   : > { %v3057_v8 = vadd.f32 %v5260_v50, %v3050_v6  ;;  %v3058_v9 = vadd.f32 %v5260_v50, %v3051_v7 }
 0x7ff   : > { %v3059_v10 = vmax.f32 %v3057_v8, 0.0  ;;  %v3060_v11 = vmax.f32 %v3058_v9, 0.0 }
 0x801   : > { %v3061_v12 = vmin.f32 %v3059_v10, 50.0  ;;  %v3062_v28 = vmin.f32 %v3060_v11, 50.0 }
 0x803   : > { %v3072_v30 = vpack.c.bf16 %v3062_v28, %v3061_v12 }
 0x805   : > { %5875 = vmatpush3.bf16.msra.mxu0 %v3072_v30 }
 0x806   : > { %5417 = vmatprep.subr.bf16.mxu0 %v6775_v18 }
 0x808   : > { %5877 = vmatmul.mubr.msk.bf16.vlgmr.msra.gmra.mrb[44].mxu0 %vm493_vm0, %v6770_v13 }
 0x809   : > { %5880 = vmatprep.mubr.msk.bf16.mxu0 %vm6864_vm1, %v6865_v27  ;;  %5418 = vmatpush3.bf16.msra.mxu0 %v6776_v19  ;;  %v3451_v19 = vld [vmem:[%s7932_s11] sm:$0xff] }
 0x80a   : > { %5419 = vmatprep.subr.bf16.mxu0 %v6777_v20  ;;  %v3452_v20 = vld [vmem:[%s7932_s11 + $0x8] sm:$0xff] }
 0x80d   : > { %5420 = vmatpush3.bf16.msra.mxu0 %v6778_v22 }
 0x80e   : > { %5421 = vmatprep.subr.bf16.mxu0 %v6779_v23  ;;  %v3471_v23 = vand.u32 4294901760, %v3451_v19 }
 0x810   : > { %5881 = vmatmul.mubr.msk.bf16.gmra.mrb[48].mxu0 %vm493_vm0, %v6771_v14 }
 0x811   : > { %5884 = vmatprep.mubr.msk.bf16.mxu0 %vm6864_vm1, %v6865_v27  ;;  %5422 = vmatpush3.bf16.msra.mxu0 %v6780_v26  ;;  %v3474_v26 = vand.u32 4294901760, %v3452_v20 }
 0x812   : > { %5423 = vmatprep.subr.bf16.mxu0 %v6781_v31 }
 0x813   : > { %v7548_v31 = vpack.c.bf16 %v3474_v26, %v3471_v23  ;;  %v3562_v42 = vsub.f32 %v3452_v20, %v3474_v26 }
 0x815   : > { %5424 = vmatpush3.bf16.msra.mxu0 %v6782_v32  ;;  %v3453_v32 = vld [vmem:[%s7932_s11 + $0x10] sm:$0xff] }
 0x816   : > { %5425 = vmatprep.subr.bf16.mxu0 %v6783_v33  ;;  %v3454_v33 = vld [vmem:[%s7932_s11 + $0x18] sm:$0xff] }
 0x818   : > { %5885 = vmatmul.mubr.msk.bf16.gmra.mrb[52].mxu0 %vm493_vm0, %v6772_v15 }
 0x819   : > { %5888 = vmatprep.mubr.msk.bf16.mxu0 %vm6864_vm1, %v6865_v27  ;;  %5426 = vmatpush3.bf16.msra.mxu0 %v6784_v36  ;;  %v3477_v36 = vand.u32 4294901760, %v3453_v32 }
 0x81a   : > { %5427 = vmatprep.subr.bf16.mxu0 %v6785_v21  ;;  %v3480_v21 = vand.u32 4294901760, %v3454_v33 }
 0x81d   : > { %5428 = vmatpush3.bf16.msra.mxu0 %v6786_v34 }
 0x81e   : > { %5429 = vmatprep.subr.bf16.mxu0 %v6787_v39 }
 0x820   : > { %5889 = vmatmul.mubr.msk.bf16.gmra.mrb[56].mxu0 %vm493_vm0, %v6773_v16 }
 0x821   : > { %5892 = vmatprep.mubr.msk.bf16.mxu0 %vm6864_vm1, %v6865_v27  ;;  %5430 = vmatpush3.bf16.msra.mxu0 %v6788_v46  ;;  %v3555_v46 = vsub.f32 %v3451_v19, %v3471_v23 }
 0x822   : > { %5431 = vmatprep.subr.bf16.mxu0 %v6790_v49 }
 0x825   : > { %5432 = vmatpush3.bf16.msra.mxu0 %v6791_v54  ;;  %v3576_v54 = vsub.f32 %v3454_v33, %v3480_v21 }
 0x826   : > { %6426 = vmatprep.subr.bf16.mxu0 %v6863_v24 }
 0x828   : > { %5893 = vmatmul.mubr.msk.bf16.gmra.mrb[60].mxu0 %vm493_vm0, %v6774_v17 }
 0x8db   : > { %v3145_v37 = vpop.f32.mrb[44].mxu0 }
 0x8dc   : > { %v5878_v29 = vpop.f32.mrb[45].mxu0 }
 0x8dd   : > { %v3148_v43 = vpop.f32.mrb[46].mxu0  ;;  %v3455_v29 = vld [vmem:[%s7932_s11 + $0x20] sm:$0xff] }
 0x8de   : > { %v5879_v47 = vpop.f32.mrb[47].mxu0 }
 0x8df   : > { %v3483_v47 = vand.u32 4294901760, %v3455_v29 }
 0x8e3   : > { %v3153_v45 = vpop.f32.mrb[48].mxu0 }
 0x8e4   : > { %v5882_v35 = vpop.f32.mrb[49].mxu0 }
 0x8e5   : > { %v3156_v38 = vpop.f32.mrb[50].mxu0  ;;  %v3457_v35 = vld [vmem:[%s7932_s11 + $0x30] sm:$0xff] }
 0x8e6   : > { %v5883_v41 = vpop.f32.mrb[51].mxu0  ;;  %v3489_v34 = vand.u32 4294901760, %v3457_v35 }
 0x8eb   : > { %v3161_v40 = vpop.f32.mrb[52].mxu0 }
 0x8ec   : > { %v5886_v48 = vpop.f32.mrb[53].mxu0 }
 0x8ed   : > { %v3164_v44 = vpop.f32.mrb[54].mxu0  ;;  %v3556_v48 = vand.u32 4294901760, %v3555_v46 }
 0x8ee   : > { %v6736_v51 = vpack.i.bf16 %v3148_v43, %v3164_v44  ;;  %v5887_v52 = vpop.f32.mrb[55].mxu0  ;;  %v3456_v43 = vld [vmem:[%s7932_s11 + $0x28] sm:$0xff]  ;;  %v3563_v44 = vand.u32 4294901760, %v3562_v42 }
 0x8ef   : > { %v3557_v49 = vsub.f32 %v3555_v46, %v3556_v48  ;;  %v3569_v52 = vsub.f32 %v3453_v32, %v3477_v36 }
 0x8f0   : > { %6737 = vrot.lane.b32.xlu1 %v6736_v51, %s7949_s1  ;;  %v3564_v51 = vsub.f32 %v3562_v42, %v3563_v44  ;;  %v7606_v20 = vpack.c.bf16 %v3563_v44, %v3556_v48 }
 0x8f1   : > { %v3558_v55 = vand.u32 4294901760, %v3557_v49 }
 0x8f3   : > { %v3169_v56 = vpop.f32.mrb[56].mxu0 }
 0x8f4   : > { %v6741_v58 = vpack.i.bf16 %v3153_v45, %v3169_v56  ;;  %v5890_v59 = vpop.f32.mrb[57].mxu0  ;;  %v3486_v45 = vand.u32 4294901760, %v3456_v43  ;;  %v3565_v56 = vand.u32 4294901760, %v3564_v51 }
 0x8f5   : > { %v3172_v60 = vpop.f32.mrb[58].mxu0  ;;  %v3577_v59 = vand.u32 4294901760, %v3576_v54 }
 0x8f6   : > { %v6746_v57 = vpack.i.bf16 %v3156_v38, %v3172_v60  ;;  %6742 = vrot.lane.b32.xlu0 %v6741_v58, %s7950_s2  ;;  %v5891_v61 = vpop.f32.mrb[59].mxu0  ;;  %v3458_v38 = vld [vmem:[%s7932_s11 + $0x38] sm:$0xff]  ;;  %v7578_v41 = vpack.c.bf16 %v3486_v45, %v3483_v47  ;;  %v3570_v58 = vand.u32 4294901760, %v3569_v52  ;;  %v7590_v60 = vpack.c.bf16 %v3565_v56, %v3558_v55  ;;  %s459_s2 = sand.u32 1, %s6853_s30  }
 0x8f7   : > { %v3492_v39 = vand.u32 4294901760, %v3458_v38  ;;  %v3578_v61 = vsub.f32 %v3576_v54, %v3577_v59  ;;  %s460_s21 = scalar_lea.vmem [#allocation2], %s459_s2  ;;  %s5139_s1 = scalar_lea.sflag [#allocation3], %s459_s2 }
 0x8f8   : > { %6747 = vrot.lane.b32.xlu1 %v6746_v57, %s7951_s28  ;;  %v3571_v57 = vsub.f32 %v3569_v52, %v3570_v58  ;;  %s5151_s20 = sshll.u32 %s460_s21, 4  ;;  %s7881_s20 = int_to_ptr.vmem [resolvable:$true] %s5151_s20 }
 0x8f9   : > { %s6799_s28 = scalar_lea.vmem %s7881_s20, 16  ;;  %p6806_p0 = scmp.lt.s32.totalorder %s7881_s20, %s6804_s18 }
 0x8fa   : > { %p6800_p11 = scmp.ne.s32.totalorder %s7881_s20, %s6799_s28  ;;  %p6807_p1 = scmp.lt.s32.totalorder %s6805_s3, %s6799_s28 }
 0x8fb   : > { %v3177_v62 = vpop.f32.mrb[60].mxu0 }
 0x8fc   : > { %v3215_v63 = vpack.c.bf16 %v3177_v62, %v3177_v62  ;;  %v5894_v0 = vpop.f32.mrb[61].mxu0  ;;  %v3583_v62 = vsub.f32 %v3455_v29, %v3483_v47  ;;  %v5290_v29 = vld [vmem:[%s7931_s10] ss:$0 sm:$0xff]  ;;  %p6801_p12 = pnand %p6800_p11, %p6988_p5  ;;  %p6808_p2 = por %p6807_p1, %p6806_p0 }
 0x8fd   : > { %v3180_v1 = vpop.f32.mrb[62].mxu0  ;;  %v3572_v0 = vand.u32 4294901760, %v3571_v57 }
 0x8fe   : > { %v5895_v2 = vpop.f32.mrb[63].mxu0  ;;  %5901 = vmatmul.mubr.msk.bf16.vlgmr.msra.gmra.mrb[16].mxu1 %vm1888_vm3, %v3215_v63  ;;  %v3590_v63 = vsub.f32 %v3456_v43, %v3486_v45  ;;  %v3579_v1 = vand.u32 4294901760, %v3578_v61  ;;  %p6802_p13 = pneg %p6801_p12 }
 0x8ff   : > { %5920 = vmatprep.mubr.msk.f32.mxu1 %vm6864_vm1, %v6865_v27  ;;  %6356 = vmatpush3.bf16.msra.mxu1 %v7548_v31  ;;  %v3584_v2 = vand.u32 4294901760, %v3583_v62 }
 0x900   : > { %6357 = vmatprep.subr.bf16.mxu1 %v6863_v24  ;;  %p6809_p3 = pnand %p6808_p2, %p6802_p13 }
 0x962   : > { %v6738_v53 = vpop.permute.xlu1 %6737 }
 0x963   : > { %v6740_v3 = vunpack.i.h.bf16 %v6738_v53  ;;  %v6739_v4 = vunpack.i.l.bf16 %v6738_v53  ;;  %v3591_v53 = vand.u32 4294901760, %v3590_v63 }
 0x965   : > { %v3207_v7 = vsel %vm1888_vm3, %v3145_v37, %v6740_v3  ;;  %v3210_v8 = vsel %vm1888_vm3, %v3161_v40, %v6739_v4  ;;  %v7560_v37 = vpack.c.bf16 %v3480_v21, %v3477_v36  ;;  %v7581_v40 = vpack.c.bf16 %v3492_v39, %v3489_v34 }
 0x966   : > { %v7592_v3 = vpack.c.bf16 %v3579_v1, %v3572_v0  ;;  %v3585_v4 = vsub.f32 %v3583_v62, %v3584_v2  ;;  %v7610_v23 = vpack.c.bf16 %v3591_v53, %v3584_v2 }
 0x967   : > { %6359 = vmatpush3.bf16.msra.mxu1 %v7560_v37 }
 0x968   : > { %v6743_v5 = vpop.permute.xlu0 %6742  ;;  %6360 = vmatprep.subr.bf16.mxu1 %v6863_v24 }
 0x969   : > { %v6745_v50 = vunpack.i.h.bf16 %v6743_v5  ;;  %v6744_v6 = vunpack.i.l.bf16 %v6743_v5  ;;  %v3597_v5 = vsub.f32 %v3457_v35, %v3489_v34 }
 0x96a   : > { %v6748_v9 = vpop.permute.xlu1 %6747 }
 0x96b   : > { %v3208_v10 = vsel %vm1697_vm2, %v3207_v7, %v6745_v50  ;;  %v3211_v11 = vsel %vm1697_vm2, %v3210_v8, %v6744_v6  ;;  %v6750_v12 = vunpack.i.h.bf16 %v6748_v9  ;;  %v6749_v28 = vunpack.i.l.bf16 %v6748_v9  ;;  %6362 = vmatpush3.bf16.msra.mxu1 %v7578_v41 }
 0x96c   : > { %6363 = vmatprep.subr.bf16.mxu1 %v6863_v24  ;;  %v3604_v50 = vsub.f32 %v3458_v38, %v3492_v39  ;;  %v3592_v6 = vsub.f32 %v3590_v63, %v3591_v53  ;;  %v3586_v7 = vand.u32 4294901760, %v3585_v4  ;;  %v3598_v8 = vand.u32 4294901760, %v3597_v5 }
 0x96d   : > { %v3209_v30 = vsel %vm1899_vm6, %v3208_v10, %v6750_v12  ;;  %v3212_v13 = vsel %vm1899_vm6, %v3211_v11, %v6749_v28 }
 0x96e   : > { %v3213_v14 = vpack.c.bf16 %v3209_v30, %v3209_v30  ;;  %v3214_v15 = vpack.c.bf16 %v3212_v13, %v3212_v13  ;;  %v3605_v9 = vand.u32 4294901760, %v3604_v50  ;;  %v3593_v10 = vand.u32 4294901760, %v3592_v6 }
 0x96f   : > { %6365 = vmatpush3.bf16.msra.mxu1 %v7581_v40  ;;  %v3599_v11 = vsub.f32 %v3597_v5, %v3598_v8  ;;  %v7604_v19 = vpack.c.bf16 %v3604_v50, %v3597_v5 }
 0x970   : > { %3395 = vmatprep.mubr.bf16.mxu0 %v3214_v15  ;;  %6366 = vmatprep.subr.bf16.mxu1 %v6863_v24  ;;  %v3606_v12 = vsub.f32 %v3604_v50, %v3605_v9  ;;  %v7594_v28 = vpack.c.bf16 %v3593_v10, %v3586_v7  ;;  %v7598_v15 = vpack.c.bf16 %v3562_v42, %v3555_v46 }
 0x971   : > { %3396 = vmatmul.mubr.bf16.vlgmr.msra.gmra.mrb[64].mxu0 %v3213_v14  ;;  %v3600_v30 = vand.u32 4294901760, %v3599_v11  ;;  %v7612_v26 = vpack.c.bf16 %v3605_v9, %v3598_v8  ;;  %v4592_v11 = vld [vmem:[%s7933_s12 + $0x20] sm:$0xff] }
 0x972   : > { %6034 = vmatprep.mubr.msk.f32.mxu0 %vm6864_vm1, %v6865_v27  ;;  %6428 = vmatpush3.bf16.msra.mxu0 %v7548_v31  ;;  %v3607_v13 = vand.u32 4294901760, %v3606_v12  ;;  %v4593_v12 = vld [vmem:[%s7933_s12 + $0x28] sm:$0xff] }
 0x973   : > { %6429 = vmatprep.subr.bf16.mxu0 %v6863_v24 }
 0x974   : > { %v7596_v14 = vpack.c.bf16 %v3607_v13, %v3600_v30  ;;  %v4613_v30 = vand.u32 4294901760, %v4592_v11  ;;  %v4616_v13 = vand.u32 4294901760, %v4593_v12 }
 0x976   : > { %6431 = vmatpush3.bf16.msra.mxu0 %v7560_v37 }
 0x977   : > { %6432 = vmatprep.subr.bf16.mxu0 %v6863_v24 }
 0x97a   : > { %6434 = vmatpush3.bf16.msra.mxu0 %v7578_v41 }
 0x97b   : > { %6435 = vmatprep.subr.bf16.mxu0 %v6863_v24 }
 0x97e   : > { %6437 = vmatpush3.bf16.msra.mxu0 %v7581_v40 }
 0x97f   : > { %6438 = vmatprep.subr.bf16.mxu0 %v6863_v24 }
 0x9d1   : > { %v7540_v16 = vpop.f32.mrb[16].mxu1 }
 0x9d2   : > { %v5902_v17 = vpop.f32.mrb[17].mxu1 }
 0x9d3   : > { %v3440_v18 = vpop.f32.mrb[18].mxu1  ;;  %v7600_v17 = vpack.c.bf16 %v3576_v54, %v3569_v52 }
 0x9d4   : > { %v5903_v22 = vpop.f32.mrb[19].mxu1  ;;  %v7602_v18 = vpack.c.bf16 %v3590_v63, %v3583_v62 }
 0x9d5   : > { %v7608_v22 = vpack.c.bf16 %v3577_v59, %v3570_v58 }
 0xa44   : > { %v5433_v32 = vpop.f32.mrb[64].mxu0 }
 0xa45   : > { %v5434_v33 = vpop.f32.mrb[65].mxu0 }
 0xa46   : > { %v5435_v36 = vadd.f32 %v5434_v33, %v5433_v32  ;;  %v5436_v21 = vpop.f32.mrb[66].mxu0  ;;  %v7774_v32 = vsub.f32 %v4593_v12, %v4616_v13 }
 0xa47   : > { %v5437_v43 = vpop.f32.mrb[67].mxu0 }
 0xa48   : > { %v3438_v47 = vadd.f32 %v5435_v36, %v7540_v16  ;;  %v7782_v43 = vpack.c.bf16 %v4616_v13, %v4613_v30  ;;  %v5293_v13 = vld [vmem:[%s7931_s10 + $0x2] ss:$0 sm:$0xff] }
 0xa4a   : > { %v7618_v45 = vadd.f32 %v5290_v29, %v3438_v47 }
 0xa4c   : > { %v5291_v35 = vclamps-f32 %v7618_v45, 50.0 }
 0xa4e   : > { %v3460_v38 = vsel %vm3459_vm8, %v5291_v35, 0.0 }
 0xa4f   : > { %v3461_v34 = vrot.slane %v3460_v38, 4 }
 0xa51   : > { %v3462_v39 = vadd.f32 %v3461_v34, %v3460_v38 }
 0xa53   : > { %v3463_v46 = vrot.slane %v3462_v39, 2 }
 0xa55   : > { %v3464_v42 = vadd.f32 %v3463_v46, %v3462_v39 }
 0xa57   : > { %v3465_v48 = vrot.slane %v3464_v42, 1 }
 0xa59   : > { %v3466_v44 = vadd.f32 %v3465_v48, %v3464_v42 }
 0xa5b   : > { %v3468_v49 = vsel %vm1697_vm2, %v3466_v44, 0 }
 0xa5c   : > { %v3543_v51 = vand.u32 4294901760, %v3468_v49 }
 0xa5e   : > { %v3544_v52 = vsub.f32 %v3468_v49, %v3543_v51 }
 0xa60   : > { %v3545_v16 = vand.u32 4294901760, %v3544_v52 }
 0xa62   : > { %v3546_v54 = vsub.f32 %v3544_v52, %v3545_v16 }
 0xa64   : > { %v3547_v55 = vand.u32 4294901760, %v3546_v54 }
 0xa66   : > { %5921 = vmatmul.mubr.f32.vlgmr.msra.gmra.mrb[20].mxu1 %v3547_v55  ;;  %v4721_v55 = vand.u32 4294901760, %v7774_v32 }
 0xa67   : > { %6368 = vmatpush3.bf16.msra.mxu1 %v7590_v60  ;;  %5939 = vmatprep.mubr.msk.f32.mxu1 %vm6864_vm1, %v6865_v27 }
 0xa68   : > { %6369 = vmatprep.subr.bf16.mxu1 %v6863_v24 }
 0xa6b   : > { %6371 = vmatpush3.bf16.msra.mxu1 %v7592_v3 }
 0xa6c   : > { %6372 = vmatprep.subr.bf16.mxu1 %v6863_v24 }
 0xa6f   : > { %6374 = vmatpush3.bf16.msra.mxu1 %v7594_v28 }
 0xa70   : > { %6375 = vmatprep.subr.bf16.mxu1 %v6863_v24 }
 0xa73   : > { %6377 = vmatpush3.bf16.msra.mxu1 %v7596_v14 }
 0xa74   : > { %6378 = vmatprep.subr.bf16.mxu1 %v6863_v24 }
 0xa76   : > { %5940 = vmatmul.mubr.f32.vlgmr.msra.gmra.mrb[20].mxu1 %v3543_v51 }
 0xa77   : > { %6380 = vmatpush3.bf16.msra.mxu1 %v7598_v15  ;;  %5958 = vmatprep.mubr.msk.f32.mxu1 %vm6864_vm1, %v6865_v27 }
 0xa78   : > { %6381 = vmatprep.subr.bf16.mxu1 %v6863_v24 }
 0xa7b   : > { %6383 = vmatpush3.bf16.msra.mxu1 %v7600_v17 }
 0xa7c   : > { %6384 = vmatprep.subr.bf16.mxu1 %v6863_v24 }
 0xa7f   : > { %6386 = vmatpush3.bf16.msra.mxu1 %v7602_v18 }
 0xa80   : > { %6387 = vmatprep.subr.bf16.mxu1 %v6863_v24 }
 0xa83   : > { %6389 = vmatpush3.bf16.msra.mxu1 %v7604_v19 }
 0xa84   : > { %6390 = vmatprep.subr.bf16.mxu1 %v6863_v24 }
 0xa86   : > { %5959 = vmatmul.mubr.f32.vlgmr.msra.gmra.mrb[20].mxu1 %v3544_v52 }
 0xa87   : > { %6392 = vmatpush3.bf16.msra.mxu1 %v7548_v31  ;;  %5977 = vmatprep.mubr.msk.f32.mxu1 %vm6864_vm1, %v6865_v27 }
 0xa88   : > { %6393 = vmatprep.subr.bf16.mxu1 %v6863_v24 }
 0xa8b   : > { %6395 = vmatpush3.bf16.msra.mxu1 %v7560_v37 }
 0xa8c   : > { %6396 = vmatprep.subr.bf16.mxu1 %v6863_v24 }
 0xa8f   : > { %6398 = vmatpush3.bf16.msra.mxu1 %v7578_v41 }
 0xa90   : > { %6399 = vmatprep.subr.bf16.mxu1 %v6863_v24 }
 0xa93   : > { %6401 = vmatpush3.bf16.msra.mxu1 %v7581_v40 }
 0xa94   : > { %6402 = vmatprep.subr.bf16.mxu1 %v6863_v24 }
 0xa96   : > { %5978 = vmatmul.mubr.f32.vlgmr.msra.gmra.mrb[20].mxu1 %v3545_v16 }
 0xa97   : > { %6404 = vmatpush3.bf16.msra.mxu1 %v7606_v20  ;;  %5996 = vmatprep.mubr.msk.f32.mxu1 %vm6864_vm1, %v6865_v27 }
 0xa98   : > { %6405 = vmatprep.subr.bf16.mxu1 %v6863_v24 }
 0xa9b   : > { %6407 = vmatpush3.bf16.msra.mxu1 %v7608_v22 }
 0xa9c   : > { %6408 = vmatprep.subr.bf16.mxu1 %v6863_v24 }
 0xa9f   : > { %6410 = vmatpush3.bf16.msra.mxu1 %v7610_v23 }
 0xaa0   : > { %6411 = vmatprep.subr.bf16.mxu1 %v6863_v24 }
 0xaa3   : > { %6413 = vmatpush3.bf16.msra.mxu1 %v7612_v26 }
 0xaa4   : > { %6414 = vmatprep.subr.bf16.mxu1 %v6863_v24 }
 0xaa6   : > { %5997 = vmatmul.mubr.f32.vlgmr.msra.gmra.mrb[20].mxu1 %v3543_v51 }
 0xaa7   : > { %6416 = vmatpush3.bf16.msra.mxu1 %v7548_v31  ;;  %6015 = vmatprep.mubr.msk.f32.mxu1 %vm6864_vm1, %v6865_v27 }
 0xaa8   : > { %6417 = vmatprep.subr.bf16.mxu1 %v6863_v24 }
 0xaab   : > { %6419 = vmatpush3.bf16.msra.mxu1 %v7560_v37 }
 0xaac   : > { %6420 = vmatprep.subr.bf16.mxu1 %v6863_v24 }
 0xaaf   : > { %6422 = vmatpush3.bf16.msra.mxu1 %v7578_v41 }
 0xab0   : > { %6423 = vmatprep.subr.bf16.mxu1 %v6863_v24 }
 0xab3   : > { %6425 = vmatpush3.bf16.msra.mxu1 %v7581_v40 }
 0xab4   : > { %6498 = vmatprep.subr.bf16.mxu1 %v6863_v24 }
 0xab6   : > { %6016 = vmatmul.mubr.f32.vlgmr.msra.gmra.mrb[20].mxu1 %v3543_v51 }
 0xab7   : > { %6148 = vmatprep.mubr.msk.f32.mxu1 %vm6864_vm1, %v6865_v27 }
 0xb89   : > { %v4003_v56 = vpop.f32.mrb[20].mxu1 }
 0xb8a   : > { %v4010_v58 = vrot.slane %v4003_v56, %v7103_v25  ;;  %v6017_v59 = vpop.f32.mrb[21].mxu1 }
 0xb8b   : > { %v4722_v59 = vsub.f32 %v7774_v32, %v4721_v55 }
 0xb8c   : > { %v7680_v57 = vsub.f32 %v5291_v35, %v4010_v58 }
 0xb8e   : > { %v4012_v61 = vmul.f32 %v7680_v57, %v7680_v57 }
 0xb90   : > { %v4013_v62 = vsel %vm3459_vm8, %v4012_v61, 0.0 }
 0xb91   : > { %v4014_v63 = vrot.slane %v4013_v62, 4 }
 0xb93   : > { %v4015_v0 = vadd.f32 %v4014_v63, %v4013_v62  ;;  %v4723_v62 = vand.u32 4294901760, %v4722_v59 }
 0xb95   : > { %v4016_v1 = vrot.slane %v4015_v0, 2 }
 0xb97   : > { %v4017_v2 = vadd.f32 %v4016_v1, %v4015_v0 }
 0xb99   : > { %v4018_v53 = vrot.slane %v4017_v2, 1 }
 0xb9b   : > { %v4019_v4 = vadd.f32 %v4018_v53, %v4017_v2 }
 0xb9d   : > { %v4021_v5 = vsel %vm1697_vm2, %v4019_v4, 0 }
 0xb9e   : > { %v4096_v50 = vand.u32 4294901760, %v4021_v5 }
 0xba0   : > { %v4097_v6 = vsub.f32 %v4021_v5, %v4096_v50 }
 0xba2   : > { %v4098_v7 = vand.u32 4294901760, %v4097_v6 }
 0xba4   : > { %v4099_v8 = vsub.f32 %v4097_v6, %v4098_v7 }
 0xba6   : > { %v4100_v9 = vand.u32 4294901760, %v4099_v8 }
 0xba8   : > { %6035 = vmatmul.mubr.f32.vlgmr.msra.gmra.mrb[42].mxu0 %v4100_v9 }
 0xba9   : > { %6440 = vmatpush3.bf16.msra.mxu0 %v7590_v60  ;;  %6053 = vmatprep.mubr.msk.f32.mxu0 %vm6864_vm1, %v6865_v27  ;;  %v4589_v60 = vld [vmem:[%s7933_s12 + $0x8] sm:$0xff] }
 0xbaa   : > { %6441 = vmatprep.subr.bf16.mxu0 %v6863_v24  ;;  %v4604_v10 = vand.u32 4294901760, %v4589_v60 }
 0xbad   : > { %6443 = vmatpush3.bf16.msra.mxu0 %v7592_v3 }
 0xbae   : > { %6444 = vmatprep.subr.bf16.mxu0 %v6863_v24 }
 0xbb1   : > { %6446 = vmatpush3.bf16.msra.mxu0 %v7594_v28 }
 0xbb2   : > { %6447 = vmatprep.subr.bf16.mxu0 %v6863_v24 }
 0xbb5   : > { %6449 = vmatpush3.bf16.msra.mxu0 %v7596_v14  ;;  %v4594_v14 = vld [vmem:[%s7933_s12 + $0x30] sm:$0xff] }
 0xbb6   : > { %6450 = vmatprep.subr.bf16.mxu0 %v6863_v24  ;;  %v4619_v33 = vand.u32 4294901760, %v4594_v14 }
 0xbb8   : > { %6054 = vmatmul.mubr.f32.vlgmr.msra.gmra.mrb[42].mxu0 %v4096_v50  ;;  %v7777_v21 = vsub.f32 %v4594_v14, %v4619_v33 }
 0xbb9   : > { %6452 = vmatpush3.bf16.msra.mxu0 %v7598_v15  ;;  %6072 = vmatprep.mubr.msk.f32.mxu0 %vm6864_vm1, %v6865_v27  ;;  %v4595_v15 = vld [vmem:[%s7933_s12 + $0x38] sm:$0xff] }
 0xbba   : > { %6453 = vmatprep.subr.bf16.mxu0 %v6863_v24  ;;  %v4622_v36 = vand.u32 4294901760, %v4595_v15  ;;  %v4728_v63 = vand.u32 4294901760, %v7777_v21 }
 0xbbc   : > { %v7779_v29 = vsub.f32 %v4595_v15, %v4622_v36  ;;  %v7786_v47 = vpack.c.bf16 %v4622_v36, %v4619_v33  ;;  %v4729_v2 = vsub.f32 %v7777_v21, %v4728_v63 }
 0xbbd   : > { %6455 = vmatpush3.bf16.msra.mxu0 %v7600_v17 }
 0xbbe   : > { %6456 = vmatprep.subr.bf16.mxu0 %v6863_v24  ;;  %v4735_v0 = vand.u32 4294901760, %v7779_v29  ;;  %v4730_v4 = vand.u32 4294901760, %v4729_v2  ;;  %v6532_v9 = vpack.c.bf16 %v7779_v29, %v7777_v21 }
 0xbc0   : > { %v4736_v53 = vsub.f32 %v7779_v29, %v4735_v0 }
 0xbc1   : > { %6458 = vmatpush3.bf16.msra.mxu0 %v7602_v18 }
 0xbc2   : > { %6459 = vmatprep.subr.bf16.mxu0 %v6863_v24  ;;  %v4737_v5 = vand.u32 4294901760, %v4736_v53 }
 0xbc5   : > { %6461 = vmatpush3.bf16.msra.mxu0 %v7604_v19  ;;  %v7763_v19 = vsub.f32 %v4589_v60, %v4604_v10 }
 0xbc6   : > { %6462 = vmatprep.subr.bf16.mxu0 %v6863_v24 }
 0xbc7   : > { %v4693_v35 = vand.u32 4294901760, %v7763_v19 }
 0xbc8   : > { %6073 = vmatmul.mubr.f32.vlgmr.msra.gmra.mrb[42].mxu0 %v4097_v6 }
 0xbc9   : > { %6464 = vmatpush3.bf16.msra.mxu0 %v7548_v31  ;;  %6091 = vmatprep.mubr.msk.f32.mxu0 %vm6864_vm1, %v6865_v27  ;;  %v4694_v34 = vsub.f32 %v7763_v19, %v4693_v35 }
 0xbca   : > { %6465 = vmatprep.subr.bf16.mxu0 %v6863_v24 }
 0xbcb   : > { %v4695_v46 = vand.u32 4294901760, %v4694_v34 }
 0xbcd   : > { %6467 = vmatpush3.bf16.msra.mxu0 %v7560_v37 }
 0xbce   : > { %6468 = vmatprep.subr.bf16.mxu0 %v6863_v24 }
 0xbd1   : > { %6470 = vmatpush3.bf16.msra.mxu0 %v7578_v41 }
 0xbd2   : > { %6471 = vmatprep.subr.bf16.mxu0 %v6863_v24 }
 0xbd5   : > { %6473 = vmatpush3.bf16.msra.mxu0 %v7581_v40 }
 0xbd6   : > { %6474 = vmatprep.subr.bf16.mxu0 %v6863_v24 }
 0xbd8   : > { %6092 = vmatmul.mubr.f32.vlgmr.msra.gmra.mrb[42].mxu0 %v4098_v7 }
 0xbd9   : > { %6476 = vmatpush3.bf16.msra.mxu0 %v7606_v20  ;;  %6110 = vmatprep.mubr.msk.f32.mxu0 %vm6864_vm1, %v6865_v27 }
 0xbda   : > { %6477 = vmatprep.subr.bf16.mxu0 %v6863_v24 }
 0xbdd   : > { %6479 = vmatpush3.bf16.msra.mxu0 %v7608_v22 }
 0xbde   : > { %6480 = vmatprep.subr.bf16.mxu0 %v6863_v24 }
 0xbe1   : > { %6482 = vmatpush3.bf16.msra.mxu0 %v7610_v23  ;;  %v7769_v23 = vsub.f32 %v4592_v11, %v4613_v30 }
 0xbe2   : > { %6483 = vmatprep.subr.bf16.mxu0 %v6863_v24 }
 0xbe3   : > { %v4714_v54 = vand.u32 4294901760, %v7769_v23  ;;  %v6529_v8 = vpack.c.bf16 %v7774_v32, %v7769_v23 }
 0xbe5   : > { %6485 = vmatpush3.bf16.msra.mxu0 %v7612_v26  ;;  %v4715_v58 = vsub.f32 %v7769_v23, %v4714_v54 }
 0xbe6   : > { %6486 = vmatprep.subr.bf16.mxu0 %v6863_v24 }
 0xbe7   : > { %v4716_v61 = vand.u32 4294901760, %v4715_v58 }
 0xbe8   : > { %6111 = vmatmul.mubr.f32.vlgmr.msra.gmra.mrb[42].mxu0 %v4096_v50 }
 0xbe9   : > { %6488 = vmatpush3.bf16.msra.mxu0 %v7548_v31  ;;  %6129 = vmatprep.mubr.msk.f32.mxu0 %vm6864_vm1, %v6865_v27  ;;  %v4588_v31 = vld [vmem:[%s7933_s12] sm:$0xff]  ;;  %v6517_v1 = vpack.c.bf16 %v4723_v62, %v4716_v61 }
 0xbea   : > { %6489 = vmatprep.subr.bf16.mxu0 %v6863_v24  ;;  %v4601_v3 = vand.u32 4294901760, %v4588_v31 }
 0xbec   : > { %v7759_v17 = vpack.c.bf16 %v4604_v10, %v4601_v3  ;;  %v7761_v18 = vsub.f32 %v4588_v31, %v4601_v3  ;;  %v7819_v3 = vpack.c.bf16 %v4735_v0, %v4728_v63 }
 0xbed   : > { %6491 = vmatpush3.bf16.msra.mxu0 %v7560_v37  ;;  %v4590_v37 = vld [vmem:[%s7933_s12 + $0x10] sm:$0xff] }
 0xbee   : > { %6492 = vmatprep.subr.bf16.mxu0 %v6863_v24  ;;  %6500 = vmatpush3.bf16.msra.mxu1 %v7759_v17  ;;  %v4686_v45 = vand.u32 4294901760, %v7761_v18  ;;  %v6523_v6 = vpack.c.bf16 %v7763_v19, %v7761_v18 }
 0xbef   : > { %6501 = vmatprep.subr.bf16.mxu1 %v6863_v24 }
 0xbf0   : > { %v4687_v38 = vsub.f32 %v7761_v18, %v4686_v45  ;;  %v6547_v31 = vpack.c.bf16 %v4693_v35, %v4686_v45 }
 0xbf1   : > { %6494 = vmatpush3.bf16.msra.mxu0 %v7578_v41  ;;  %v4591_v41 = vld [vmem:[%s7933_s12 + $0x18] sm:$0xff] }
 0xbf2   : > { %6495 = vmatprep.subr.bf16.mxu0 %v6863_v24  ;;  %v4610_v28 = vand.u32 4294901760, %v4591_v41  ;;  %v4688_v39 = vand.u32 4294901760, %v4687_v38 }
 0xbf4   : > { %v7767_v22 = vsub.f32 %v4591_v41, %v4610_v28  ;;  %v6511_v44 = vpack.c.bf16 %v4695_v46, %v4688_v39 }
 0xbf5   : > { %6497 = vmatpush3.bf16.msra.mxu0 %v7581_v40  ;;  %v4607_v40 = vand.u32 4294901760, %v4590_v37 }
 0xbf6   : > { %v4707_v48 = vand.u32 4294901760, %v7767_v22 }
 0xbf7   : > { %v7765_v20 = vsub.f32 %v4590_v37, %v4607_v40  ;;  %v7772_v26 = vpack.c.bf16 %v4610_v28, %v4607_v40  ;;  %v7817_v37 = vpack.c.bf16 %v4721_v55, %v4714_v54  ;;  %v5292_v28 = vld [vmem:[%s7931_s10 + $0x1] ss:$0 sm:$0xff] }
 0xbf8   : > { %6130 = vmatmul.mubr.f32.vlgmr.msra.gmra.mrb[42].mxu0 %v4096_v50  ;;  %v4708_v51 = vsub.f32 %v7767_v22, %v4707_v48  ;;  %v6520_v50 = vpack.c.bf16 %v4737_v5, %v4730_v4 }
 0xbf9   : > { %6503 = vmatpush3.bf16.msra.mxu1 %v7772_v26  ;;  %v4700_v42 = vand.u32 4294901760, %v7765_v20  ;;  %v6526_v7 = vpack.c.bf16 %v7767_v22, %v7765_v20 }
 0xbfa   : > { %6504 = vmatprep.subr.bf16.mxu1 %v6863_v24  ;;  %v4709_v16 = vand.u32 4294901760, %v4708_v51 }
 0xbfb   : > { %v4701_v49 = vsub.f32 %v7765_v20, %v4700_v42  ;;  %v7815_v60 = vpack.c.bf16 %v4707_v48, %v4700_v42 }
 0xbfd   : > { %6506 = vmatpush3.bf16.msra.mxu1 %v7782_v43  ;;  %v4702_v52 = vand.u32 4294901760, %v4701_v49 }
 0xbfe   : > { %6507 = vmatprep.subr.bf16.mxu1 %v6863_v24 }
 0xbff   : > { %v6514_v56 = vpack.c.bf16 %v4709_v16, %v4702_v52 }
 0xc01   : > { %6509 = vmatpush3.bf16.msra.mxu1 %v7786_v47 }
 0xc02   : > { %6510 = vmatprep.subr.bf16.mxu1 %v6863_v24 }
 0xccb   : > { %v4556_v10 = vpop.f32.mrb[42].mxu0 }
 0xccc   : > { %v6581_v41 = vadd.f32 1e-05, %v4556_v10  ;;  %v6131_v40 = vpop.f32.mrb[43].mxu0 }
 0xcce   : > { %6797 = vrsqrt.f32 %v6581_v41 }
 0xcd8   : > { %v6798_v11 = vpop.eup %6797 }
 0xcd9   : > { %v4564_v12 = vrot.slane %v6798_v11, %v7103_v25 }
 0xcdb   : > { %v4565_v30 = vmul.f32 %v4564_v12, %v7680_v57 }
 0xcdd   : > { %v4571_v14 = vmul.f32 %v5292_v28, %v4565_v30 }
 0xcdf   : > { %v4577_v15 = vadd.f32 %v5293_v13, %v4571_v14 }
 0xce1   : > { %v4578_v18 = vmax.f32 %v4577_v15, 0.0 }
 0xce3   : > { %v4579_v19 = vmin.f32 %v4578_v18, 50.0 }
 0xce5   : > { %v4580_v20 = vsel %vm3459_vm8, %v4579_v19, 0.0 }
 0xce6   : > { %v4581_v22 = vrot.slane %v4580_v20, 4 }
 0xce8   : > { %v4582_v23 = vadd.f32 %v4581_v22, %v4580_v20 }
 0xcea   : > { %v4583_v32 = vrot.slane %v4582_v23, 2 }
 0xcec   : > { %v4584_v25 = vadd.f32 %v4583_v32, %v4582_v23 }
 0xcee   : > { %v4585_v33 = vrot.slane %v4584_v25, 1 }
 0xcf0   : > { %v4586_v36 = vadd.f32 %v4585_v33, %v4584_v25 }
 0xcf2   : > { %v4587_v21 = vmul.f32 0.25, %v4586_v36 }
 0xcf4   : > { %v4598_v29 = vsel %vm1697_vm2, %v4587_v21, 0 }
 0xcf5   : > { %v4673_v57 = vand.u32 4294901760, %v4598_v29 }
 0xcf7   : > { %v4674_v45 = vsub.f32 %v4598_v29, %v4673_v57 }
 0xcf9   : > { %v4675_v35 = vand.u32 4294901760, %v4674_v45 }
 0xcfb   : > { %v4676_v38 = vsub.f32 %v4674_v45, %v4675_v35 }
 0xcfd   : > { %v4677_v34 = vand.u32 4294901760, %v4676_v38 }
 0xcff   : > { %6149 = vmatmul.mubr.f32.vlgmr.msra.gmra.mrb[22].mxu1 %v4677_v34 }
 0xd00   : > { %6512 = vmatpush3.bf16.msra.mxu1 %v6511_v44  ;;  %6167 = vmatprep.mubr.msk.f32.mxu1 %vm6864_vm1, %v6865_v27 }
 0xd01   : > { %6513 = vmatprep.subr.bf16.mxu1 %v6863_v24 }
 0xd04   : > { %6515 = vmatpush3.bf16.msra.mxu1 %v6514_v56 }
 0xd05   : > { %6516 = vmatprep.subr.bf16.mxu1 %v6863_v24 }
 0xd08   : > { %6518 = vmatpush3.bf16.msra.mxu1 %v6517_v1 }
 0xd09   : > { %6519 = vmatprep.subr.bf16.mxu1 %v6863_v24 }
 0xd0c   : > { %6521 = vmatpush3.bf16.msra.mxu1 %v6520_v50 }
 0xd0d   : > { %6522 = vmatprep.subr.bf16.mxu1 %v6863_v24 }
 0xd0f   : > { %6168 = vmatmul.mubr.f32.vlgmr.msra.gmra.mrb[22].mxu1 %v4673_v57 }
 0xd10   : > { %6524 = vmatpush3.bf16.msra.mxu1 %v6523_v6  ;;  %6186 = vmatprep.mubr.msk.f32.mxu1 %vm6864_vm1, %v6865_v27 }
 0xd11   : > { %6525 = vmatprep.subr.bf16.mxu1 %v6863_v24 }
 0xd14   : > { %6527 = vmatpush3.bf16.msra.mxu1 %v6526_v7 }
 0xd15   : > { %6528 = vmatprep.subr.bf16.mxu1 %v6863_v24 }
 0xd18   : > { %6530 = vmatpush3.bf16.msra.mxu1 %v6529_v8 }
 0xd19   : > { %6531 = vmatprep.subr.bf16.mxu1 %v6863_v24 }
 0xd1c   : > { %6533 = vmatpush3.bf16.msra.mxu1 %v6532_v9 }
 0xd1d   : > { %6534 = vmatprep.subr.bf16.mxu1 %v6863_v24 }
 0xd1f   : > { %6187 = vmatmul.mubr.f32.vlgmr.msra.gmra.mrb[22].mxu1 %v4674_v45 }
 0xd20   : > { %6536 = vmatpush3.bf16.msra.mxu1 %v7759_v17  ;;  %6205 = vmatprep.mubr.msk.f32.mxu1 %vm6864_vm1, %v6865_v27 }
 0xd21   : > { %6537 = vmatprep.subr.bf16.mxu1 %v6863_v24 }
 0xd24   : > { %6539 = vmatpush3.bf16.msra.mxu1 %v7772_v26 }
 0xd25   : > { %6540 = vmatprep.subr.bf16.mxu1 %v6863_v24 }
 0xd28   : > { %6542 = vmatpush3.bf16.msra.mxu1 %v7782_v43 }
 0xd29   : > { %6543 = vmatprep.subr.bf16.mxu1 %v6863_v24 }
 0xd2c   : > { %6545 = vmatpush3.bf16.msra.mxu1 %v7786_v47 }
 0xd2d   : > { %6546 = vmatprep.subr.bf16.mxu1 %v6863_v24 }
 0xd2f   : > { %6206 = vmatmul.mubr.f32.vlgmr.msra.gmra.mrb[22].mxu1 %v4675_v35 }
 0xd30   : > { %6548 = vmatpush3.bf16.msra.mxu1 %v6547_v31  ;;  %6224 = vmatprep.mubr.msk.f32.mxu1 %vm6864_vm1, %v6865_v27 }
 0xd31   : > { %6549 = vmatprep.subr.bf16.mxu1 %v6863_v24 }
 0xd34   : > { %6551 = vmatpush3.bf16.msra.mxu1 %v7815_v60 }
 0xd35   : > { %6552 = vmatprep.subr.bf16.mxu1 %v6863_v24 }
 0xd38   : > { %6554 = vmatpush3.bf16.msra.mxu1 %v7817_v37 }
 0xd39   : > { %6555 = vmatprep.subr.bf16.mxu1 %v6863_v24 }
 0xd3c   : > { %6557 = vmatpush3.bf16.msra.mxu1 %v7819_v3 }
 0xd3d   : > { %6558 = vmatprep.subr.bf16.mxu1 %v6863_v24 }
 0xd3f   : > { %6225 = vmatmul.mubr.f32.vlgmr.msra.gmra.mrb[22].mxu1 %v4673_v57 }
 0xd40   : > { %6560 = vmatpush3.bf16.msra.mxu1 %v7759_v17  ;;  %6243 = vmatprep.mubr.msk.f32.mxu1 %vm6864_vm1, %v6865_v27  ;;  %v4596_v17 = vld [vmem:[%s7934_s13] sm:$0x1] }
 0xd41   : > { %6561 = vmatprep.subr.bf16.mxu1 %v6863_v24 }
 0xd44   : > { %6563 = vmatpush3.bf16.msra.mxu1 %v7772_v26 }
 0xd45   : > { %6564 = vmatprep.subr.bf16.mxu1 %v6863_v24 }
 0xd48   : > { %6566 = vmatpush3.bf16.msra.mxu1 %v7782_v43 }
 0xd49   : > { %6567 = vmatprep.subr.bf16.mxu1 %v6863_v24 }
 0xd4c   : > { %6569 = vmatpush3.bf16.msra.mxu1 %v7786_v47 }
 0xd4f   : > { %6244 = vmatmul.mubr.f32.vlgmr.msra.gmra.mrb[22].mxu1 %v4673_v57 }
 0xe22   : > { %v5133_v27 = vpop.f32.mrb[22].mxu1 }
 0xe23   : > { %v6582_v26 = vadd.f32 %v5133_v27, %v4596_v17  ;;  %v6245_v39 = vpop.f32.mrb[23].mxu1 }
 0xe25   : > { %5137 = vst [vmem:[%s460_s21] sm:$0x1] %v6582_v26 }
 0xe26   : > { %6812 = shalt.err (!%p6809_p3)
}
 0xe27   : > { %s6813_s2 = scalar_lea.hbm %s7879_s26, 16  ;;  %s6817_s27 = scalar_lea.hbm %s7935_s14, 32 }
 0xe28   : > { %p6814_p4 = scmp.ne.s32.totalorder %s7879_s26, %s6813_s2  ;;  %p6818_p9 = scmp.lt.u32.totalorder %s7879_s26, %s7935_s14 }
 0xe29   : > { %p6819_p10 = scmp.lt.u32.totalorder %s6817_s27, %s6813_s2  ;;  %p6821_p12 = scmp.lt.u32.totalorder %s6813_s2, %s7879_s26 }
 0xe2a   : > { %p6815_p7 = pnand %p6814_p4, %p6988_p5 }
 0xe2b   : > { %p6820_p11 = por %p6819_p10, %p6818_p9 }
 0xe2c   : > { %p6816_p8 = pneg %p6815_p7 }
 0xe2d   : > { %p6822_p13 = por %p6821_p12, %p6820_p11 }
 0xe2f   : > { %p6823_p0 = pnand %p6822_p13, %p6816_p8 }
 0xe31   : > { %6826 = shalt.err (!%p6823_p0)
}
 0xe32   : > { %6651 = dma.vmem_to_hbm [thread:$0]  (%p6988_p5), %s7881_s20, 16, %s7879_s26, %s5139_s1  }
 0xe33 PF: > { %p6657_p1 = scmp.ge.s32.totalorder %s6861_s16, 2  ;;  %s5163_s3 = sand.u32 1, %s6849_s29  }
 0xe34   : > { %s5164_s28 = scalar_lea.sflag [#allocation3], %s5163_s3 }
 0xe35   : > { %p6654_p2 = pnand %p6657_p1, %p6992_p6 }
 0xe37   : > { %6844 = dma.done.wait (!%p6654_p2), %s5164_s28, 16  }
 0xe38   : > { %6846 = vsyncadd (!%p6654_p2), %s5164_s28, 4294967280  ;;  %p24_p3 = scmp.ge.s32.totalorder %s6975_s19, 4   ;;  %s7952_s29 = smov %s6853_s30 }
 0xe39   : > { %s7953_s30 = smov %s6857_s15  ;;  %s7954_s15 = smov %s6986_s22 }
 0xe3a   : > { %s7955_s16 = smov %s6975_s19  ;;  %26 = sbr.rel (!%p24_p3) target bundleno = 8 (0x8), region = 111 }
 0xe41   :  { %5168 = vsyncpa [#allocation3], 1 }
 0xe42   :  { %5170 = vsyncpa [#allocation3 + $0x1], 1 }

</bundles_post_ra>
